<compile_context>
chip_gen: v7x
topology: tpu7x:2x2x1
jax: 0.10.0
libtpu: 0.0.40
codegen_flags: <defaults>
</compile_context>

<pallas_src>
import jax
import jax.numpy as jnp
from jax.experimental import pallas as pl
from jax.experimental.pallas import tpu as pltpu

EPS = 1e-5
LANE = 128


def _round_up(x, m):
    return (x + m - 1) // m * m


def _vmem_budget_bytes():
    """Generation-aware scoped-VMEM budget (headroom on v7x's 64 MiB per TC)."""
    try:
        cap = pltpu.get_tpu_info().vmem_capacity_bytes
    except Exception:
        cap = 64 * 1024 * 1024
    return min(int(cap * 3 // 4), 64 * 1024 * 1024)


# ---------------------------------------------------------------------------
# Fused BasicBlock (downsample branch)
# ---------------------------------------------------------------------------
def basic_block_forward(x_nchw, params, stride):
    """x_nchw: (N, Cin, H, W) f32 -> (N, planes, Ho, Wo) f32."""
    N, Cin, H, W = x_nchw.shape
    planes = params["w1"].shape[0]
    s = int(stride)
    Ho = (H - 1) // s + 1            # 3x3/pad1/stride-s == 1x1/stride-s output size
    Wo = (W - 1) // s + 1
    Cpi = _round_up(Cin, LANE)       # lane-padded input channels
    Cpo = _round_up(planes, LANE)    # lane-padded output channels
    S2 = s * s
    M = Ho * Wo

    # ---- activations: NHWC, bf16 from the first pass, spatial pad = 1 ------
    x = jnp.transpose(x_nchw, (0, 2, 3, 1)).astype(jnp.bfloat16)
    xp = jnp.pad(x, ((0, 0), (1, 1), (1, 1), (0, Cpi - Cin)))   # (N, H+2, W+2, Cpi)

    # ---- space-to-batch parity split: every conv tap becomes a contiguous
    #      static window of one parity slab (no strided in-kernel reads) ------
    Hs = Ho + 2 // s
    Ws = Wo + 2 // s
    slabs = jnp.zeros((N, S2, Hs, Ws, Cpi), jnp.bfloat16)
    for py in range(s):
        for px in range(s):
            sl = xp[:, py::s, px::s, :]
            h = min(sl.shape[1], Hs)
            w = min(sl.shape[2], Ws)
            slabs = slabs.at[:, py * s + px, :h, :w, :].set(sl[:, :h, :w, :])
    slabs = slabs.reshape(N * S2, Hs, Ws, Cpi)

    # ---- weights: per-tap (Cin, Cout) matrices, lane-padded, bf16 -----------
    def taps_3x3(w_oihw):                       # (O,I,3,3) -> (9, I, O)
        o, i, _, _ = w_oihw.shape
        return jnp.transpose(w_oihw, (2, 3, 1, 0)).reshape(9, i, o)

    w1 = jnp.zeros((9, Cpi, Cpo), jnp.bfloat16).at[:, :Cin, :planes].set(
        taps_3x3(params["w1"]).astype(jnp.bfloat16))
    w2 = jnp.zeros((9, Cpo, Cpo), jnp.bfloat16).at[:, :planes, :planes].set(
        taps_3x3(params["w2"]).astype(jnp.bfloat16))
    wd = jnp.zeros((Cpi, Cpo), jnp.bfloat16).at[:Cin, :planes].set(
        params["wd"][:, :, 0, 0].T.astype(jnp.bfloat16))

    # ---- BatchNorm (eval) as per-channel affine, applied in f32 in-kernel ---
    def bn_affine(p):
        g, b, m, v = p
        sc = g / jnp.sqrt(v + EPS)
        return sc, b - m * sc

    s1, b1 = bn_affine(params["bn1"])
    s2, b2 = bn_affine(params["bn2"])
    sd, bd = bn_affine(params["bnd"])
    aff = jnp.zeros((8, Cpo), jnp.float32)
    aff = aff.at[0, :planes].set(s1).at[1, :planes].set(b1)
    aff = aff.at[2, :planes].set(s2).at[3, :planes].set(sd)
    aff = aff.at[4, :planes].set(b2 + bd)

    # ---- the fused kernel ----------------------------------------------------
    def kernel(x_ref, w1_ref, w2_ref, wd_ref, aff_ref, o_ref, o1p_ref):
        sc1 = aff_ref[0:1, :]
        bi1 = aff_ref[1:2, :]
        sc2 = aff_ref[2:3, :]
        scd = aff_ref[3:4, :]
        bi2d = aff_ref[4:5, :]

        # conv1 (3x3, stride s): 9 accumulating MXU dots over shifted windows.
        acc1 = jnp.zeros((M, Cpo), jnp.float32)
        for dy in range(3):
            for dx in range(3):
                p = (dy % s) * s + (dx % s)
                r0, c0 = dy // s, dx // s
                lhs = x_ref[p, r0:r0 + Ho, c0:c0 + Wo, :].reshape(M, Cpi)
                acc1 = acc1 + jnp.dot(lhs, w1_ref[dy * 3 + dx],
                                      preferred_element_type=jnp.float32)
        out1 = jnp.maximum(acc1 * sc1 + bi1, 0.0).astype(jnp.bfloat16)

        # conv1 output stays VMEM-resident; zero border supplies conv2's pad=1.
        o1p_ref[...] = jnp.zeros_like(o1p_ref)
        o1p_ref[1:Ho + 1, 1:Wo + 1, :] = out1.reshape(Ho, Wo, Cpo)

        # conv2 (3x3, stride 1): 9 more accumulating dots.
        acc2 = jnp.zeros((M, Cpo), jnp.float32)
        for dy in range(3):
            for dx in range(3):
                lhs = o1p_ref[dy:dy + Ho, dx:dx + Wo, :].reshape(M, Cpo)
                acc2 = acc2 + jnp.dot(lhs, w2_ref[dy * 3 + dx],
                                      preferred_element_type=jnp.float32)

        # downsample conv1x1(stride) on x == tap (1,1) of the padded input.
        pd = (1 % s) * s + (1 % s)
        rd = cd = 1 // s
        xd = x_ref[pd, rd:rd + Ho, cd:cd + Wo, :].reshape(M, Cpi)
        accd = jnp.dot(xd, wd_ref[...], preferred_element_type=jnp.float32)

        out = jnp.maximum(acc2 * sc2 + accd * scd + bi2d, 0.0)
        o_ref[...] = out.reshape(Ho, Wo, Cpo).astype(jnp.bfloat16)

    # ---- VMEM accounting: pinned weights (2 bufs each) + scratch + temps -----
    bf2, f4 = 2, 4
    est = (2 * S2 * Hs * Ws * Cpi * bf2          # per-image input slabs (streamed)
           + 2 * 9 * Cpi * Cpo * bf2             # w1 (pinned)
           + 2 * 9 * Cpo * Cpo * bf2             # w2 (pinned)
           + 2 * Cpi * Cpo * bf2                 # wd (pinned)
           + 2 * 8 * Cpo * f4                    # bn affine (pinned)
           + 2 * Ho * Wo * Cpo * bf2             # output block
           + (Ho + 2) * (Wo + 2) * Cpo * bf2     # conv1-output scratch
           + 4 * M * Cpo * f4)                   # live f32 accumulators / temps
    budget = _vmem_budget_bytes()
    # TODO(synk): add output-row tiling (1-row halo) for images whose per-image
    # working set exceeds VMEM; standard ResNet downsample blocks fit easily.
    assert est <= budget, f"per-image working set {est}B exceeds VMEM budget {budget}B"

    out = pl.pallas_call(
        kernel,
        out_shape=jax.ShapeDtypeStruct((N, Ho, Wo, Cpo), jnp.bfloat16),
        grid=(N,),
        in_specs=[
            pl.BlockSpec((S2, Hs, Ws, Cpi), lambda n: (n, 0, 0, 0)),   # image slabs
            pl.BlockSpec((9, Cpi, Cpo), lambda n: (0, 0, 0)),          # w1 pinned
            pl.BlockSpec((9, Cpo, Cpo), lambda n: (0, 0, 0)),          # w2 pinned
            pl.BlockSpec((Cpi, Cpo), lambda n: (0, 0)),                # wd pinned
            pl.BlockSpec((8, Cpo), lambda n: (0, 0)),                  # bn affine
        ],
        out_specs=pl.BlockSpec((None, Ho, Wo, Cpo), lambda n: (n, 0, 0, 0)),
        scratch_shapes=[pltpu.VMEM((Ho + 2, Wo + 2, Cpo), jnp.bfloat16)],
        compiler_params=pltpu.CompilerParams(
            dimension_semantics=("parallel",),
            vmem_limit_bytes=budget,
        ),
    )(slabs, w1, w2, wd, aff)

    out = out[:, :, :, :planes].astype(jnp.float32)
    return jnp.transpose(out, (0, 3, 1, 2))                # NHWC -> NCHW


# ---------------------------------------------------------------------------
# Pure-JAX reference (mirrors the PyTorch ops exactly, eval-mode BatchNorm2d)
# ---------------------------------------------------------------------------
def reference_forward(x, params, stride):
    def conv(x, w, s, pad):
        return jax.lax.conv_general_dilated(
            x, w, (s, s), ((pad, pad), (pad, pad)),
            dimension_numbers=("NCHW", "OIHW", "NCHW"))

    def bn(x, p):
        g, b, m, v = p
        inv = g / jnp.sqrt(v + EPS)
        return x * inv[None, :, None, None] + (b - m * inv)[None, :, None, None]

    out = jax.nn.relu(bn(conv(x, params["w1"], stride, 1), params["bn1"]))
    out = bn(conv(out, params["w2"], 1, 1), params["bn2"])
    ident = bn(conv(x, params["wd"], stride, 0), params["bnd"])
    return jax.nn.relu(out + ident)


# ---------------------------------------------------------------------------
if __name__ == "__main__":
    key = jax.random.PRNGKey(0)
    N, inplanes, H, W = 2, 4, 16, 16
    planes, stride = 8, 2

    ks = jax.random.split(key, 16)

    def bn_params(k0, k1, k2, k3, c):
        return (jax.random.uniform(k0, (c,), jnp.float32, 0.5, 1.5),   # gamma
                jax.random.normal(k1, (c,), jnp.float32) * 0.1,        # beta
                jax.random.normal(k2, (c,), jnp.float32) * 0.1,        # running_mean
                jax.random.uniform(k3, (c,), jnp.float32, 0.5, 1.5))   # running_var

    params = {
        "w1": jax.random.normal(ks[0], (planes, inplanes, 3, 3), jnp.float32) * 0.1,
        "bn1": bn_params(ks[1], ks[2], ks[3], ks[4], planes),
        "w2": jax.random.normal(ks[5], (planes, planes, 3, 3), jnp.float32) * 0.1,
        "bn2": bn_params(ks[6], ks[7], ks[8], ks[9], planes),
        "wd": jax.random.normal(ks[10], (planes, inplanes, 1, 1), jnp.float32) * 0.1,
        "bnd": bn_params(ks[11], ks[12], ks[13], ks[14], planes),
    }

    x = jax.random.normal(ks[15], (N, inplanes, H, W), jnp.float32)

    out = jax.block_until_ready(basic_block_forward(x, params, stride))
    ref = jax.block_until_ready(reference_forward(x, params, stride))

    assert out.shape == (N, planes, H // stride, W // stride), out.shape
    # bf16 activations/weights with f32 MXU accumulation -> bf16-level tolerance.
    max_err = float(jnp.max(jnp.abs(out - ref)))
    assert max_err < 5e-2, max_err

    print("KERNEL_OK")
</pallas_src>

<mosaic_0001>
module attributes {stable_mosaic.version = 11 : i64} {
  func.func @kernel(%arg0: i32, %arg1: memref<4x9x9x128xbf16, #tpu.memory_space<vmem>>, %arg2: memref<9x128x128xbf16, #tpu.memory_space<vmem>>, %arg3: memref<9x128x128xbf16, #tpu.memory_space<vmem>>, %arg4: memref<128x128xbf16, #tpu.memory_space<vmem>>, %arg5: memref<8x128xf32, #tpu.memory_space<vmem>>, %arg6: memref<1x8x8x128xbf16, #tpu.memory_space<vmem>>, %arg7: memref<10x10x128xbf16, #tpu.memory_space<vmem>>) attributes {dimension_semantics = [#tpu.dimension_semantics<parallel>], iteration_bounds = array<i64: 2>, scalar_prefetch = 0 : i64, scratch_operands = 1 : i64, tpu.core_type = #tpu.core_type<tc>, window_params = [{transform_indices = @transform_0, window_bounds = array<i64: 4, 9, 9, 128>}, {pipeline_mode = #tpu.pipeline_mode<synchronous>, transform_indices = @transform_1, window_bounds = array<i64: 9, 128, 128>}, {pipeline_mode = #tpu.pipeline_mode<synchronous>, transform_indices = @transform_2, window_bounds = array<i64: 9, 128, 128>}, {pipeline_mode = #tpu.pipeline_mode<synchronous>, transform_indices = @transform_3, window_bounds = array<i64: 128, 128>}, {pipeline_mode = #tpu.pipeline_mode<synchronous>, transform_indices = @transform_4, window_bounds = array<i64: 8, 128>}, {transform_indices = @transform_5, window_bounds = array<i64: 1, 8, 8, 128>}]} {
    %c0 = arith.constant 0 : index
    %c0_0 = arith.constant 0 : index
    %0 = vector.load %arg5[%c0, %c0_0] : memref<8x128xf32, #tpu.memory_space<vmem>>, vector<1x128xf32>
    %c1 = arith.constant 1 : index
    %c0_1 = arith.constant 0 : index
    %1 = vector.load %arg5[%c1, %c0_1] : memref<8x128xf32, #tpu.memory_space<vmem>>, vector<1x128xf32>
    %c2 = arith.constant 2 : index
    %c0_2 = arith.constant 0 : index
    %2 = vector.load %arg5[%c2, %c0_2] : memref<8x128xf32, #tpu.memory_space<vmem>>, vector<1x128xf32>
    %c3 = arith.constant 3 : index
    %c0_3 = arith.constant 0 : index
    %3 = vector.load %arg5[%c3, %c0_3] : memref<8x128xf32, #tpu.memory_space<vmem>>, vector<1x128xf32>
    %c4 = arith.constant 4 : index
    %c0_4 = arith.constant 0 : index
    %4 = vector.load %arg5[%c4, %c0_4] : memref<8x128xf32, #tpu.memory_space<vmem>>, vector<1x128xf32>
    %cst = arith.constant 0.000000e+00 : f32
    %5 = vector.broadcast %cst : f32 to vector<64x128xf32>
    %c0_5 = arith.constant 0 : index
    %c0_6 = arith.constant 0 : index
    %c0_7 = arith.constant 0 : index
    %c0_8 = arith.constant 0 : index
    %6 = vector.load %arg1[%c0_5, %c0_6, %c0_7, %c0_8] : memref<4x9x9x128xbf16, #tpu.memory_space<vmem>>, vector<1x8x8x128xbf16>
    %7 = vector.shape_cast %6 : vector<1x8x8x128xbf16> to vector<8x8x128xbf16>
    %8 = vector.shape_cast %7 : vector<8x8x128xbf16> to vector<64x128xbf16>
    %c0_9 = arith.constant 0 : index
    %c0_10 = arith.constant 0 : index
    %c0_11 = arith.constant 0 : index
    %9 = vector.load %arg2[%c0_9, %c0_10, %c0_11] : memref<9x128x128xbf16, #tpu.memory_space<vmem>>, vector<1x128x128xbf16>
    %10 = vector.shape_cast %9 : vector<1x128x128xbf16> to vector<128x128xbf16>
    %cst_12 = arith.constant dense<0.000000e+00> : vector<64x128xf32>
    %11 = tpu.matmul %8, %10, %cst_12 {dimension_numbers = #tpu.dot_dimension_numbers<[1], [0], [0], [1], [0, 0, 1, 1], [], []>} : vector<64x128xbf16>, vector<128x128xbf16>, vector<64x128xf32> -> vector<64x128xf32>
    %12 = arith.addf %5, %11 : vector<64x128xf32>
    %c1_13 = arith.constant 1 : index
    %c0_14 = arith.constant 0 : index
    %c0_15 = arith.constant 0 : index
    %c0_16 = arith.constant 0 : index
    %13 = vector.load %arg1[%c1_13, %c0_14, %c0_15, %c0_16] : memref<4x9x9x128xbf16, #tpu.memory_space<vmem>>, vector<1x8x8x128xbf16>
    %14 = vector.shape_cast %13 : vector<1x8x8x128xbf16> to vector<8x8x128xbf16>
    %15 = vector.shape_cast %14 : vector<8x8x128xbf16> to vector<64x128xbf16>
    %c1_17 = arith.constant 1 : index
    %c0_18 = arith.constant 0 : index
    %c0_19 = arith.constant 0 : index
    %16 = vector.load %arg2[%c1_17, %c0_18, %c0_19] : memref<9x128x128xbf16, #tpu.memory_space<vmem>>, vector<1x128x128xbf16>
    %17 = vector.shape_cast %16 : vector<1x128x128xbf16> to vector<128x128xbf16>
    %cst_20 = arith.constant dense<0.000000e+00> : vector<64x128xf32>
    %18 = tpu.matmul %15, %17, %cst_20 {dimension_numbers = #tpu.dot_dimension_numbers<[1], [0], [0], [1], [0, 0, 1, 1], [], []>} : vector<64x128xbf16>, vector<128x128xbf16>, vector<64x128xf32> -> vector<64x128xf32>
    %19 = arith.addf %12, %18 : vector<64x128xf32>
    %c0_21 = arith.constant 0 : index
    %c0_22 = arith.constant 0 : index
    %c1_23 = arith.constant 1 : index
    %c0_24 = arith.constant 0 : index
    %20 = vector.load %arg1[%c0_21, %c0_22, %c1_23, %c0_24] : memref<4x9x9x128xbf16, #tpu.memory_space<vmem>>, vector<1x8x8x128xbf16>
    %21 = vector.shape_cast %20 : vector<1x8x8x128xbf16> to vector<8x8x128xbf16>
    %22 = vector.shape_cast %21 : vector<8x8x128xbf16> to vector<64x128xbf16>
    %c2_25 = arith.constant 2 : index
    %c0_26 = arith.constant 0 : index
    %c0_27 = arith.constant 0 : index
    %23 = vector.load %arg2[%c2_25, %c0_26, %c0_27] : memref<9x128x128xbf16, #tpu.memory_space<vmem>>, vector<1x128x128xbf16>
    %24 = vector.shape_cast %23 : vector<1x128x128xbf16> to vector<128x128xbf16>
    %cst_28 = arith.constant dense<0.000000e+00> : vector<64x128xf32>
    %25 = tpu.matmul %22, %24, %cst_28 {dimension_numbers = #tpu.dot_dimension_numbers<[1], [0], [0], [1], [0, 0, 1, 1], [], []>} : vector<64x128xbf16>, vector<128x128xbf16>, vector<64x128xf32> -> vector<64x128xf32>
    %26 = arith.addf %19, %25 : vector<64x128xf32>
    %c2_29 = arith.constant 2 : index
    %c0_30 = arith.constant 0 : index
    %c0_31 = arith.constant 0 : index
    %c0_32 = arith.constant 0 : index
    %27 = vector.load %arg1[%c2_29, %c0_30, %c0_31, %c0_32] : memref<4x9x9x128xbf16, #tpu.memory_space<vmem>>, vector<1x8x8x128xbf16>
    %28 = vector.shape_cast %27 : vector<1x8x8x128xbf16> to vector<8x8x128xbf16>
    %29 = vector.shape_cast %28 : vector<8x8x128xbf16> to vector<64x128xbf16>
    %c3_33 = arith.constant 3 : index
    %c0_34 = arith.constant 0 : index
    %c0_35 = arith.constant 0 : index
    %30 = vector.load %arg2[%c3_33, %c0_34, %c0_35] : memref<9x128x128xbf16, #tpu.memory_space<vmem>>, vector<1x128x128xbf16>
    %31 = vector.shape_cast %30 : vector<1x128x128xbf16> to vector<128x128xbf16>
    %cst_36 = arith.constant dense<0.000000e+00> : vector<64x128xf32>
    %32 = tpu.matmul %29, %31, %cst_36 {dimension_numbers = #tpu.dot_dimension_numbers<[1], [0], [0], [1], [0, 0, 1, 1], [], []>} : vector<64x128xbf16>, vector<128x128xbf16>, vector<64x128xf32> -> vector<64x128xf32>
    %33 = arith.addf %26, %32 : vector<64x128xf32>
    %c3_37 = arith.constant 3 : index
    %c0_38 = arith.constant 0 : index
    %c0_39 = arith.constant 0 : index
    %c0_40 = arith.constant 0 : index
    %34 = vector.load %arg1[%c3_37, %c0_38, %c0_39, %c0_40] : memref<4x9x9x128xbf16, #tpu.memory_space<vmem>>, vector<1x8x8x128xbf16>
    %35 = vector.shape_cast %34 : vector<1x8x8x128xbf16> to vector<8x8x128xbf16>
    %36 = vector.shape_cast %35 : vector<8x8x128xbf16> to vector<64x128xbf16>
    %c4_41 = arith.constant 4 : index
    %c0_42 = arith.constant 0 : index
    %c0_43 = arith.constant 0 : index
    %37 = vector.load %arg2[%c4_41, %c0_42, %c0_43] : memref<9x128x128xbf16, #tpu.memory_space<vmem>>, vector<1x128x128xbf16>
    %38 = vector.shape_cast %37 : vector<1x128x128xbf16> to vector<128x128xbf16>
    %cst_44 = arith.constant dense<0.000000e+00> : vector<64x128xf32>
    %39 = tpu.matmul %36, %38, %cst_44 {dimension_numbers = #tpu.dot_dimension_numbers<[1], [0], [0], [1], [0, 0, 1, 1], [], []>} : vector<64x128xbf16>, vector<128x128xbf16>, vector<64x128xf32> -> vector<64x128xf32>
    %40 = arith.addf %33, %39 : vector<64x128xf32>
    %c2_45 = arith.constant 2 : index
    %c0_46 = arith.constant 0 : index
    %c1_47 = arith.constant 1 : index
    %c0_48 = arith.constant 0 : index
    %41 = vector.load %arg1[%c2_45, %c0_46, %c1_47, %c0_48] : memref<4x9x9x128xbf16, #tpu.memory_space<vmem>>, vector<1x8x8x128xbf16>
    %42 = vector.shape_cast %41 : vector<1x8x8x128xbf16> to vector<8x8x128xbf16>
    %43 = vector.shape_cast %42 : vector<8x8x128xbf16> to vector<64x128xbf16>
    %c5 = arith.constant 5 : index
    %c0_49 = arith.constant 0 : index
    %c0_50 = arith.constant 0 : index
    %44 = vector.load %arg2[%c5, %c0_49, %c0_50] : memref<9x128x128xbf16, #tpu.memory_space<vmem>>, vector<1x128x128xbf16>
    %45 = vector.shape_cast %44 : vector<1x128x128xbf16> to vector<128x128xbf16>
    %cst_51 = arith.constant dense<0.000000e+00> : vector<64x128xf32>
    %46 = tpu.matmul %43, %45, %cst_51 {dimension_numbers = #tpu.dot_dimension_numbers<[1], [0], [0], [1], [0, 0, 1, 1], [], []>} : vector<64x128xbf16>, vector<128x128xbf16>, vector<64x128xf32> -> vector<64x128xf32>
    %47 = arith.addf %40, %46 : vector<64x128xf32>
    %c0_52 = arith.constant 0 : index
    %c1_53 = arith.constant 1 : index
    %c0_54 = arith.constant 0 : index
    %c0_55 = arith.constant 0 : index
    %48 = vector.load %arg1[%c0_52, %c1_53, %c0_54, %c0_55] : memref<4x9x9x128xbf16, #tpu.memory_space<vmem>>, vector<1x8x8x128xbf16>
    %49 = vector.shape_cast %48 : vector<1x8x8x128xbf16> to vector<8x8x128xbf16>
    %50 = vector.shape_cast %49 : vector<8x8x128xbf16> to vector<64x128xbf16>
    %c6 = arith.constant 6 : index
    %c0_56 = arith.constant 0 : index
    %c0_57 = arith.constant 0 : index
    %51 = vector.load %arg2[%c6, %c0_56, %c0_57] : memref<9x128x128xbf16, #tpu.memory_space<vmem>>, vector<1x128x128xbf16>
    %52 = vector.shape_cast %51 : vector<1x128x128xbf16> to vector<128x128xbf16>
    %cst_58 = arith.constant dense<0.000000e+00> : vector<64x128xf32>
    %53 = tpu.matmul %50, %52, %cst_58 {dimension_numbers = #tpu.dot_dimension_numbers<[1], [0], [0], [1], [0, 0, 1, 1], [], []>} : vector<64x128xbf16>, vector<128x128xbf16>, vector<64x128xf32> -> vector<64x128xf32>
    %54 = arith.addf %47, %53 : vector<64x128xf32>
    %c1_59 = arith.constant 1 : index
    %c1_60 = arith.constant 1 : index
    %c0_61 = arith.constant 0 : index
    %c0_62 = arith.constant 0 : index
    %55 = vector.load %arg1[%c1_59, %c1_60, %c0_61, %c0_62] : memref<4x9x9x128xbf16, #tpu.memory_space<vmem>>, vector<1x8x8x128xbf16>
    %56 = vector.shape_cast %55 : vector<1x8x8x128xbf16> to vector<8x8x128xbf16>
    %57 = vector.shape_cast %56 : vector<8x8x128xbf16> to vector<64x128xbf16>
    %c7 = arith.constant 7 : index
    %c0_63 = arith.constant 0 : index
    %c0_64 = arith.constant 0 : index
    %58 = vector.load %arg2[%c7, %c0_63, %c0_64] : memref<9x128x128xbf16, #tpu.memory_space<vmem>>, vector<1x128x128xbf16>
    %59 = vector.shape_cast %58 : vector<1x128x128xbf16> to vector<128x128xbf16>
    %cst_65 = arith.constant dense<0.000000e+00> : vector<64x128xf32>
    %60 = tpu.matmul %57, %59, %cst_65 {dimension_numbers = #tpu.dot_dimension_numbers<[1], [0], [0], [1], [0, 0, 1, 1], [], []>} : vector<64x128xbf16>, vector<128x128xbf16>, vector<64x128xf32> -> vector<64x128xf32>
    %61 = arith.addf %54, %60 : vector<64x128xf32>
    %c0_66 = arith.constant 0 : index
    %c1_67 = arith.constant 1 : index
    %c1_68 = arith.constant 1 : index
    %c0_69 = arith.constant 0 : index
    %62 = vector.load %arg1[%c0_66, %c1_67, %c1_68, %c0_69] : memref<4x9x9x128xbf16, #tpu.memory_space<vmem>>, vector<1x8x8x128xbf16>
    %63 = vector.shape_cast %62 : vector<1x8x8x128xbf16> to vector<8x8x128xbf16>
    %64 = vector.shape_cast %63 : vector<8x8x128xbf16> to vector<64x128xbf16>
    %c8 = arith.constant 8 : index
    %c0_70 = arith.constant 0 : index
    %c0_71 = arith.constant 0 : index
    %65 = vector.load %arg2[%c8, %c0_70, %c0_71] : memref<9x128x128xbf16, #tpu.memory_space<vmem>>, vector<1x128x128xbf16>
    %66 = vector.shape_cast %65 : vector<1x128x128xbf16> to vector<128x128xbf16>
    %cst_72 = arith.constant dense<0.000000e+00> : vector<64x128xf32>
    %67 = tpu.matmul %64, %66, %cst_72 {dimension_numbers = #tpu.dot_dimension_numbers<[1], [0], [0], [1], [0, 0, 1, 1], [], []>} : vector<64x128xbf16>, vector<128x128xbf16>, vector<64x128xf32> -> vector<64x128xf32>
    %68 = arith.addf %61, %67 : vector<64x128xf32>
    %69 = vector.broadcast %0 : vector<1x128xf32> to vector<64x128xf32>
    %70 = arith.mulf %68, %69 : vector<64x128xf32>
    %71 = vector.broadcast %1 : vector<1x128xf32> to vector<64x128xf32>
    %72 = arith.addf %70, %71 : vector<64x128xf32>
    %cst_73 = arith.constant 0.000000e+00 : f32
    %73 = vector.broadcast %cst_73 : f32 to vector<64x128xf32>
    %74 = arith.maximumf %72, %73 : vector<64x128xf32>
    %75 = arith.truncf %74 : vector<64x128xf32> to vector<64x128xbf16>
    %cst_74 = arith.constant 0.000000e+00 : bf16
    %76 = vector.broadcast %cst_74 : bf16 to vector<10x10x128xbf16>
    %c0_75 = arith.constant 0 : index
    %c0_76 = arith.constant 0 : index
    %c0_77 = arith.constant 0 : index
    %77 = vector.load %arg7[%c0_75, %c0_76, %c0_77] : memref<10x10x128xbf16, #tpu.memory_space<vmem>>, vector<10x10x128xbf16>
    tpu.vector_store %arg7[%c0_75, %c0_76, %c0_77], %76 {strides = array<i32>} : memref<10x10x128xbf16, #tpu.memory_space<vmem>>, vector<10x10x128xbf16>,
    %78 = vector.shape_cast %75 : vector<64x128xbf16> to vector<8x8x128xbf16>
    %c1_78 = arith.constant 1 : index
    %c1_79 = arith.constant 1 : index
    %c0_80 = arith.constant 0 : index
    %79 = vector.load %arg7[%c1_78, %c1_79, %c0_80] : memref<10x10x128xbf16, #tpu.memory_space<vmem>>, vector<8x8x128xbf16>
    tpu.vector_store %arg7[%c1_78, %c1_79, %c0_80], %78 {strides = array<i32>} : memref<10x10x128xbf16, #tpu.memory_space<vmem>>, vector<8x8x128xbf16>,
    %cst_81 = arith.constant 0.000000e+00 : f32
    %80 = vector.broadcast %cst_81 : f32 to vector<64x128xf32>
    %c0_82 = arith.constant 0 : index
    %c0_83 = arith.constant 0 : index
    %c0_84 = arith.constant 0 : index
    %81 = vector.load %arg7[%c0_82, %c0_83, %c0_84] : memref<10x10x128xbf16, #tpu.memory_space<vmem>>, vector<8x8x128xbf16>
    %82 = vector.shape_cast %81 : vector<8x8x128xbf16> to vector<64x128xbf16>
    %c0_85 = arith.constant 0 : index
    %c0_86 = arith.constant 0 : index
    %c0_87 = arith.constant 0 : index
    %83 = vector.load %arg3[%c0_85, %c0_86, %c0_87] : memref<9x128x128xbf16, #tpu.memory_space<vmem>>, vector<1x128x128xbf16>
    %84 = vector.shape_cast %83 : vector<1x128x128xbf16> to vector<128x128xbf16>
    %cst_88 = arith.constant dense<0.000000e+00> : vector<64x128xf32>
    %85 = tpu.matmul %82, %84, %cst_88 {dimension_numbers = #tpu.dot_dimension_numbers<[1], [0], [0], [1], [0, 0, 1, 1], [], []>} : vector<64x128xbf16>, vector<128x128xbf16>, vector<64x128xf32> -> vector<64x128xf32>
    %86 = arith.addf %80, %85 : vector<64x128xf32>
    %c0_89 = arith.constant 0 : index
    %c1_90 = arith.constant 1 : index
    %c0_91 = arith.constant 0 : index
    %87 = vector.load %arg7[%c0_89, %c1_90, %c0_91] : memref<10x10x128xbf16, #tpu.memory_space<vmem>>, vector<8x8x128xbf16>
    %88 = vector.shape_cast %87 : vector<8x8x128xbf16> to vector<64x128xbf16>
    %c1_92 = arith.constant 1 : index
    %c0_93 = arith.constant 0 : index
    %c0_94 = arith.constant 0 : index
    %89 = vector.load %arg3[%c1_92, %c0_93, %c0_94] : memref<9x128x128xbf16, #tpu.memory_space<vmem>>, vector<1x128x128xbf16>
    %90 = vector.shape_cast %89 : vector<1x128x128xbf16> to vector<128x128xbf16>
    %cst_95 = arith.constant dense<0.000000e+00> : vector<64x128xf32>
    %91 = tpu.matmul %88, %90, %cst_95 {dimension_numbers = #tpu.dot_dimension_numbers<[1], [0], [0], [1], [0, 0, 1, 1], [], []>} : vector<64x128xbf16>, vector<128x128xbf16>, vector<64x128xf32> -> vector<64x128xf32>
    %92 = arith.addf %86, %91 : vector<64x128xf32>
    %c0_96 = arith.constant 0 : index
    %c2_97 = arith.constant 2 : index
    %c0_98 = arith.constant 0 : index
    %93 = vector.load %arg7[%c0_96, %c2_97, %c0_98] : memref<10x10x128xbf16, #tpu.memory_space<vmem>>, vector<8x8x128xbf16>
    %94 = vector.shape_cast %93 : vector<8x8x128xbf16> to vector<64x128xbf16>
    %c2_99 = arith.constant 2 : index
    %c0_100 = arith.constant 0 : index
    %c0_101 = arith.constant 0 : index
    %95 = vector.load %arg3[%c2_99, %c0_100, %c0_101] : memref<9x128x128xbf16, #tpu.memory_space<vmem>>, vector<1x128x128xbf16>
    %96 = vector.shape_cast %95 : vector<1x128x128xbf16> to vector<128x128xbf16>
    %cst_102 = arith.constant dense<0.000000e+00> : vector<64x128xf32>
    %97 = tpu.matmul %94, %96, %cst_102 {dimension_numbers = #tpu.dot_dimension_numbers<[1], [0], [0], [1], [0, 0, 1, 1], [], []>} : vector<64x128xbf16>, vector<128x128xbf16>, vector<64x128xf32> -> vector<64x128xf32>
    %98 = arith.addf %92, %97 : vector<64x128xf32>
    %c1_103 = arith.constant 1 : index
    %c0_104 = arith.constant 0 : index
    %c0_105 = arith.constant 0 : index
    %99 = vector.load %arg7[%c1_103, %c0_104, %c0_105] : memref<10x10x128xbf16, #tpu.memory_space<vmem>>, vector<8x8x128xbf16>
    %100 = vector.shape_cast %99 : vector<8x8x128xbf16> to vector<64x128xbf16>
    %c3_106 = arith.constant 3 : index
    %c0_107 = arith.constant 0 : index
    %c0_108 = arith.constant 0 : index
    %101 = vector.load %arg3[%c3_106, %c0_107, %c0_108] : memref<9x128x128xbf16, #tpu.memory_space<vmem>>, vector<1x128x128xbf16>
    %102 = vector.shape_cast %101 : vector<1x128x128xbf16> to vector<128x128xbf16>
    %cst_109 = arith.constant dense<0.000000e+00> : vector<64x128xf32>
    %103 = tpu.matmul %100, %102, %cst_109 {dimension_numbers = #tpu.dot_dimension_numbers<[1], [0], [0], [1], [0, 0, 1, 1], [], []>} : vector<64x128xbf16>, vector<128x128xbf16>, vector<64x128xf32> -> vector<64x128xf32>
    %104 = arith.addf %98, %103 : vector<64x128xf32>
    %c1_110 = arith.constant 1 : index
    %c1_111 = arith.constant 1 : index
    %c0_112 = arith.constant 0 : index
    %105 = vector.load %arg7[%c1_110, %c1_111, %c0_112] : memref<10x10x128xbf16, #tpu.memory_space<vmem>>, vector<8x8x128xbf16>
    %106 = vector.shape_cast %105 : vector<8x8x128xbf16> to vector<64x128xbf16>
    %c4_113 = arith.constant 4 : index
    %c0_114 = arith.constant 0 : index
    %c0_115 = arith.constant 0 : index
    %107 = vector.load %arg3[%c4_113, %c0_114, %c0_115] : memref<9x128x128xbf16, #tpu.memory_space<vmem>>, vector<1x128x128xbf16>
    %108 = vector.shape_cast %107 : vector<1x128x128xbf16> to vector<128x128xbf16>
    %cst_116 = arith.constant dense<0.000000e+00> : vector<64x128xf32>
    %109 = tpu.matmul %106, %108, %cst_116 {dimension_numbers = #tpu.dot_dimension_numbers<[1], [0], [0], [1], [0, 0, 1, 1], [], []>} : vector<64x128xbf16>, vector<128x128xbf16>, vector<64x128xf32> -> vector<64x128xf32>
    %110 = arith.addf %104, %109 : vector<64x128xf32>
    %c1_117 = arith.constant 1 : index
    %c2_118 = arith.constant 2 : index
    %c0_119 = arith.constant 0 : index
    %111 = vector.load %arg7[%c1_117, %c2_118, %c0_119] : memref<10x10x128xbf16, #tpu.memory_space<vmem>>, vector<8x8x128xbf16>
    %112 = vector.shape_cast %111 : vector<8x8x128xbf16> to vector<64x128xbf16>
    %c5_120 = arith.constant 5 : index
    %c0_121 = arith.constant 0 : index
    %c0_122 = arith.constant 0 : index
    %113 = vector.load %arg3[%c5_120, %c0_121, %c0_122] : memref<9x128x128xbf16, #tpu.memory_space<vmem>>, vector<1x128x128xbf16>
    %114 = vector.shape_cast %113 : vector<1x128x128xbf16> to vector<128x128xbf16>
    %cst_123 = arith.constant dense<0.000000e+00> : vector<64x128xf32>
    %115 = tpu.matmul %112, %114, %cst_123 {dimension_numbers = #tpu.dot_dimension_numbers<[1], [0], [0], [1], [0, 0, 1, 1], [], []>} : vector<64x128xbf16>, vector<128x128xbf16>, vector<64x128xf32> -> vector<64x128xf32>
    %116 = arith.addf %110, %115 : vector<64x128xf32>
    %c2_124 = arith.constant 2 : index
    %c0_125 = arith.constant 0 : index
    %c0_126 = arith.constant 0 : index
    %117 = vector.load %arg7[%c2_124, %c0_125, %c0_126] : memref<10x10x128xbf16, #tpu.memory_space<vmem>>, vector<8x8x128xbf16>
    %118 = vector.shape_cast %117 : vector<8x8x128xbf16> to vector<64x128xbf16>
    %c6_127 = arith.constant 6 : index
    %c0_128 = arith.constant 0 : index
    %c0_129 = arith.constant 0 : index
    %119 = vector.load %arg3[%c6_127, %c0_128, %c0_129] : memref<9x128x128xbf16, #tpu.memory_space<vmem>>, vector<1x128x128xbf16>
    %120 = vector.shape_cast %119 : vector<1x128x128xbf16> to vector<128x128xbf16>
    %cst_130 = arith.constant dense<0.000000e+00> : vector<64x128xf32>
    %121 = tpu.matmul %118, %120, %cst_130 {dimension_numbers = #tpu.dot_dimension_numbers<[1], [0], [0], [1], [0, 0, 1, 1], [], []>} : vector<64x128xbf16>, vector<128x128xbf16>, vector<64x128xf32> -> vector<64x128xf32>
    %122 = arith.addf %116, %121 : vector<64x128xf32>
    %c2_131 = arith.constant 2 : index
    %c1_132 = arith.constant 1 : index
    %c0_133 = arith.constant 0 : index
    %123 = vector.load %arg7[%c2_131, %c1_132, %c0_133] : memref<10x10x128xbf16, #tpu.memory_space<vmem>>, vector<8x8x128xbf16>
    %124 = vector.shape_cast %123 : vector<8x8x128xbf16> to vector<64x128xbf16>
    %c7_134 = arith.constant 7 : index
    %c0_135 = arith.constant 0 : index
    %c0_136 = arith.constant 0 : index
    %125 = vector.load %arg3[%c7_134, %c0_135, %c0_136] : memref<9x128x128xbf16, #tpu.memory_space<vmem>>, vector<1x128x128xbf16>
    %126 = vector.shape_cast %125 : vector<1x128x128xbf16> to vector<128x128xbf16>
    %cst_137 = arith.constant dense<0.000000e+00> : vector<64x128xf32>
    %127 = tpu.matmul %124, %126, %cst_137 {dimension_numbers = #tpu.dot_dimension_numbers<[1], [0], [0], [1], [0, 0, 1, 1], [], []>} : vector<64x128xbf16>, vector<128x128xbf16>, vector<64x128xf32> -> vector<64x128xf32>
    %128 = arith.addf %122, %127 : vector<64x128xf32>
    %c2_138 = arith.constant 2 : index
    %c2_139 = arith.constant 2 : index
    %c0_140 = arith.constant 0 : index
    %129 = vector.load %arg7[%c2_138, %c2_139, %c0_140] : memref<10x10x128xbf16, #tpu.memory_space<vmem>>, vector<8x8x128xbf16>
    %130 = vector.shape_cast %129 : vector<8x8x128xbf16> to vector<64x128xbf16>
    %c8_141 = arith.constant 8 : index
    %c0_142 = arith.constant 0 : index
    %c0_143 = arith.constant 0 : index
    %131 = vector.load %arg3[%c8_141, %c0_142, %c0_143] : memref<9x128x128xbf16, #tpu.memory_space<vmem>>, vector<1x128x128xbf16>
    %132 = vector.shape_cast %131 : vector<1x128x128xbf16> to vector<128x128xbf16>
    %cst_144 = arith.constant dense<0.000000e+00> : vector<64x128xf32>
    %133 = tpu.matmul %130, %132, %cst_144 {dimension_numbers = #tpu.dot_dimension_numbers<[1], [0], [0], [1], [0, 0, 1, 1], [], []>} : vector<64x128xbf16>, vector<128x128xbf16>, vector<64x128xf32> -> vector<64x128xf32>
    %134 = arith.addf %128, %133 : vector<64x128xf32>
    %c3_145 = arith.constant 3 : index
    %c0_146 = arith.constant 0 : index
    %c0_147 = arith.constant 0 : index
    %c0_148 = arith.constant 0 : index
    %135 = vector.load %arg1[%c3_145, %c0_146, %c0_147, %c0_148] : memref<4x9x9x128xbf16, #tpu.memory_space<vmem>>, vector<1x8x8x128xbf16>
    %136 = vector.shape_cast %135 : vector<1x8x8x128xbf16> to vector<8x8x128xbf16>
    %137 = vector.shape_cast %136 : vector<8x8x128xbf16> to vector<64x128xbf16>
    %c0_149 = arith.constant 0 : index
    %c0_150 = arith.constant 0 : index
    %138 = vector.load %arg4[%c0_149, %c0_150] : memref<128x128xbf16, #tpu.memory_space<vmem>>, vector<128x128xbf16>
    %cst_151 = arith.constant dense<0.000000e+00> : vector<64x128xf32>
    %139 = tpu.matmul %137, %138, %cst_151 {dimension_numbers = #tpu.dot_dimension_numbers<[1], [0], [0], [1], [0, 0, 1, 1], [], []>} : vector<64x128xbf16>, vector<128x128xbf16>, vector<64x128xf32> -> vector<64x128xf32>
    %140 = vector.broadcast %2 : vector<1x128xf32> to vector<64x128xf32>
    %141 = arith.mulf %134, %140 : vector<64x128xf32>
    %142 = vector.broadcast %3 : vector<1x128xf32> to vector<64x128xf32>
    %143 = arith.mulf %139, %142 : vector<64x128xf32>
    %144 = arith.addf %141, %143 : vector<64x128xf32>
    %145 = vector.broadcast %4 : vector<1x128xf32> to vector<64x128xf32>
    %146 = arith.addf %144, %145 : vector<64x128xf32>
    %cst_152 = arith.constant 0.000000e+00 : f32
    %147 = vector.broadcast %cst_152 : f32 to vector<64x128xf32>
    %148 = arith.maximumf %146, %147 : vector<64x128xf32>
    %149 = vector.shape_cast %148 : vector<64x128xf32> to vector<8x8x128xf32>
    %150 = arith.truncf %149 : vector<8x8x128xf32> to vector<8x8x128xbf16>
    %c0_153 = arith.constant 0 : index
    %c0_154 = arith.constant 0 : index
    %c0_155 = arith.constant 0 : index
    %c0_156 = arith.constant 0 : index
    %151 = vector.load %arg6[%c0_153, %c0_154, %c0_155, %c0_156] : memref<1x8x8x128xbf16, #tpu.memory_space<vmem>>, vector<1x8x8x128xbf16>
    %152 = vector.shape_cast %151 : vector<1x8x8x128xbf16> to vector<8x8x128xbf16>
    %153 = vector.shape_cast %150 : vector<8x8x128xbf16> to vector<1x8x8x128xbf16>
    tpu.vector_store %arg6[%c0_153, %c0_154, %c0_155, %c0_156], %153 {strides = array<i32>} : memref<1x8x8x128xbf16, #tpu.memory_space<vmem>>, vector<1x8x8x128xbf16>,
    return
  }
  func.func @transform_0(%arg0: i32) -> (i32, i32, i32, i32) {
    %c0_i32 = arith.constant 0 : i32
    %c0_i32_0 = arith.constant 0 : i32
    %c0_i32_1 = arith.constant 0 : i32
    %c0_i32_2 = arith.constant 0 : i32
    return %arg0, %c0_i32, %c0_i32_0, %c0_i32_1 : i32, i32, i32, i32
  }
  func.func @transform_1(%arg0: i32) -> (i32, i32, i32) {
    %c0_i32 = arith.constant 0 : i32
    %c0_i32_0 = arith.constant 0 : i32
    %c0_i32_1 = arith.constant 0 : i32
    %c0_i32_2 = arith.constant 0 : i32
    return %c0_i32, %c0_i32_0, %c0_i32_1 : i32, i32, i32
  }
  func.func @transform_2(%arg0: i32) -> (i32, i32, i32) {
    %c0_i32 = arith.constant 0 : i32
    %c0_i32_0 = arith.constant 0 : i32
    %c0_i32_1 = arith.constant 0 : i32
    %c0_i32_2 = arith.constant 0 : i32
    return %c0_i32, %c0_i32_0, %c0_i32_1 : i32, i32, i32
  }
  func.func @transform_3(%arg0: i32) -> (i32, i32) {
    %c0_i32 = arith.constant 0 : i32
    %c0_i32_0 = arith.constant 0 : i32
    %c0_i32_1 = arith.constant 0 : i32
    return %c0_i32, %c0_i32_0 : i32, i32
  }
  func.func @transform_4(%arg0: i32) -> (i32, i32) {
    %c0_i32 = arith.constant 0 : i32
    %c0_i32_0 = arith.constant 0 : i32
    %c0_i32_1 = arith.constant 0 : i32
    return %c0_i32, %c0_i32_0 : i32, i32
  }
  func.func @transform_5(%arg0: i32) -> (i32, i32, i32, i32) {
    %c0_i32 = arith.constant 0 : i32
    %c0_i32_0 = arith.constant 0 : i32
    %c0_i32_1 = arith.constant 0 : i32
    %c0_i32_2 = arith.constant 0 : i32
    return %arg0, %c0_i32, %c0_i32_0, %c0_i32_1 : i32, i32, i32, i32
  }
}

</mosaic_0001>

<bundles_post_ra>
// kernel: tpu_custom_call.1
= control target key start
LH: loop header
LB: loop body
LE: loop exit
PB: predicated region body
PF: predicated region fallthrough
CT: control target
= control target key end

     0   :  { %10 = vsyncpa [#allocation4], 0  ;;  %s7255_s0 = inlined_call_operand.vmem [shape: bf16[8,9,9,128], index: 0, kind: input, shape index: {}]   ;;  %s7256_s1 = inlined_call_operand.vmem [shape: bf16[9,128,128], index: 1, kind: input, shape index: {}]   ;;  %s7257_s2 = inlined_call_operand.hbm [shape: bf16[9,128,128], index: 2, kind: input, shape index: {}]   ;;  %s7258_s3 = inlined_call_operand.vmem [shape: bf16[128,128], index: 3, kind: input, shape index: {}]   ;;  %s7259_s4 = inlined_call_operand.vmem [shape: f32[8,128], index: 4, kind: input, shape index: {}]   ;;  %s7260_s5 = inlined_call_operand.hbm [shape: bf16[2,8,8,128], index: 5, kind: output, shape index: {}]  }
   0x1   :  { %11 = vsyncpa [#allocation5], 0 }
   0x2   :  { %13 = vsyncpa [#allocation5 + $0x1], 0  ;;  %s6327_s18 = smov 0   ;;  %s6329_s19 = smov 0  }
   0x3   :  { %s6331_s20 = smov 0   ;;  %s6333_s21 = smov 0  }
   0x4 LB: > { %s6348_s22 = sadd.s32 4294967295, %s6288_s21   ;;  %s4599_s23 = sadd.s32 4294967294, %s6288_s21   ;;  %s6288_s21 = sphi %s6333_s21, %s7284_s21   ;;  %s6284_s20 = sphi %s6331_s20, %s7283_s20   ;;  %s6280_s19 = sphi %s6329_s19, %s7282_s19   ;;  %s6276_s18 = sphi %s6327_s18, %s7281_s18  }
   0x5   : > { %s6352_s24 = sadd.s32 1, %s6288_s21   ;;  %s136_s25 = sadd.s32 1, %s6284_s20 }
   0x6   : > { %s133_s26 = ssub.s32 %s6288_s21, %s6352_s24  ;;  %p146_p0 = scmp.ne.s32.totalorder %s6284_s20, %s6280_s19 }
   0x7   : > { %p134_p1 = scmp.eq.s32.totalorder %s133_s26, 0  ;;  %p147_p2 = scmp.eq.s32.totalorder %s6348_s22, 1 }
   0x8   : > { %p152_p3 = scmp.ne.s32.totalorder %s6280_s19, %s6276_s18  ;;  %p153_p4 = scmp.eq.s32.totalorder %s4599_s23, 1 }
   0x9   : > { %s6363_s27 = scalar_select %p134_p1, %s6284_s20, %s136_s25  }
   0xa   : > { %p6365_p5 = por %p147_p2, %p146_p0  ;;  %p6369_p6 = por %p153_p4, %p152_p3 }
   0xb   : > { %p4600_p7 = scmp.ge.s32.totalorder %s6288_s21, 1  ;;  %p160_p8 = scmp.lt.s32.totalorder %s6288_s21, 3 }
   0xc   : > { %s7264_s28 = scalar_select %p6365_p5, 1, 0 }
   0xd   : > { %s7265_s29 = scalar_select %p6369_p6, 1, 0 }
   0xe   : > { %p7261_p9 = scmp.eq.s32.totalorder %s6348_s22, 0  ;;  %p6376_p10 = pnand %p4600_p7, %p160_p8 }
   0xf   : > { %s6290_s6 = smov [#allocation3]   ;;  %s6194_s11 = scalar_lea.hbm %s7257_s2, 9216 }
  0x10   : > { %s7266_s30 = scalar_select %p6376_p10, 1, 0 }
  0x11   : > { %s175_s7 = sshll.u32 %s6290_s6, 4  ;;  %p5953_p11 = pneg %p6376_p10  ;;  %s176_s7 = int_to_ptr.vmem [resolvable:$true] %s175_s7 }
  0x12   : > { %p6195_p13 = scmp.ne.s32.totalorder %s7257_s2, %s6194_s11  ;;  %p6201_p3 = scmp.lt.u32.totalorder %s6194_s11, %s7257_s2 }
  0x13   : > { %p6384_p12 = pnand %p7261_p9, %p5953_p11 }
  0x15   : > { %p6196_p0 = pneg %p6384_p12 }
  0x17   : > { %p6197_p1 = pnand %p6196_p0, %p6195_p13 }
  0x19   : > { %p6198_p2 = pneg %p6197_p1 }
  0x1b   : > { %p6203_p4 = pnand %p6201_p3, %p6198_p2 }
  0x1d   : > { %6206 = shalt.err (!%p6203_p4)
}
  0x1e   : > { %s6207_s16 = scalar_lea.vmem %s176_s7, 9216  ;;  %p6215_p9 = scmp.lt.s32.totalorder %s176_s7, %s176_s7 }
  0x1f   : > { %p6208_p7 = scmp.ne.s32.totalorder %s176_s7, %s6207_s16  ;;  %p6216_p6 = scmp.lt.s32.totalorder %s6207_s16, %s6207_s16 }
  0x21   : > { %p6210_p8 = pnand %p6208_p7, %p6196_p0  ;;  %p6217_p5 = por %p6216_p6, %p6215_p9 }
  0x23   : > { %p6211_p11 = pneg %p6210_p8 }
  0x25   : > { %p6218_p10 = pnand %p6217_p5, %p6211_p11 }
  0x27   : > { %6221 = shalt.err (!%p6218_p10)
}
  0x28   : > { %s6291_s17 = smov 64   ;;  %s6292_s23 = smov 4  }
  0x29   : > { %5956 = dma.hbm_to_vmem [thread:$0]  (!%p6384_p12), %s7257_s2, 9216, %s176_s7, [#allocation4], %s6291_s17, %s6291_s17, %s6292_s23  }
  0x2a   : > { %p7268_p13 = scmp.ne.s32.totalorder %s7266_s30, 0 }
  0x2b   : > { %p7269_p1 = scmp.eq.s32.totalorder (!%p7268_p13), %s6348_s22, 0 }
  0x2c   : > { %207 = sbr.rel (%p7268_p13) target bundleno = 1123 (0x463), region = 40 }
  0x33   : > { %6267 = dma.done.wait (%p7269_p1), [#allocation4], 9216   ;;  %p7270_p0 = pmov %p7269_p1 }
  0x34   : > { %s4606_s6 = sshll.u32 %s6348_s22, 2  ;;  %v6002_v0 = vld [vmem:[%s7256_s1 + $0x40] sm:$0xff]   ;;  %v6003_v1 = vld [vmem:[%s7256_s1 + $0x48] sm:$0xff]   ;;  %v6004_v2 = vld [vmem:[%s7256_s1 + $0x50] sm:$0xff]   ;;  %vm589_vm0 = vsmask.f32 3328 }
  0x35   : > { %6269 = vsyncadd (%p7270_p0), [#allocation4], 4294958080  ;;  %p237_p5 = scmp.lt.s32.totalorder %s4606_s6, 7  ;;  %5346 = vmatprep.subr.bf16.mxu0 %v6002_v0  ;;  %v6005_v3 = vld [vmem:[%s7256_s1 + $0x58] sm:$0xff]   ;;  %v6006_v5 = vld [vmem:[%s7256_s1 + $0x60] sm:$0xff]   ;;  %vm2263_vm3 = vcmask 1043456  }
  0x36   : > { %5347 = vmatpush3.bf16.msra.mxu0 %v6002_v0  ;;  %v6007_v6 = vld [vmem:[%s7256_s1 + $0x68] sm:$0xff]   ;;  %v6008_v7 = vld [vmem:[%s7256_s1 + $0x70] sm:$0xff]   ;;  %v6009_v8 = vld [vmem:[%s7256_s1 + $0x78] sm:$0xff]   ;;  %vm590_vm1 = vsmask.f32 7440  ;;  %vm2269_vm5 = vcmask 1040384  }
  0x37   : > { %s7286_s6 = smov (!%p237_p5, %s4606_s6), 7  ;;  %5348 = vmatprep.subr.bf16.mxu0 %v6003_v1  ;;  %v6011_v9 = vld [vmem:[%s7256_s1] sm:$0xff]   ;;  %v6013_v12 = vld [vmem:[%s7256_s1 + $0x8] sm:$0xff]   ;;  %v6014_v13 = vld [vmem:[%s7256_s1 + $0x10] sm:$0xff]   ;;  %vm2264_vm4 = vsmask.f32 7938 }
  0x38   : > { %s5946_s30 = smul.u32 72, %s7286_s6  ;;  %v6015_v16 = vld [vmem:[%s7256_s1 + $0x18] sm:$0xff]   ;;  %v6016_v17 = vld [vmem:[%s7256_s1 + $0x20] sm:$0xff]   ;;  %v6017_v18 = vld [vmem:[%s7256_s1 + $0x28] sm:$0xff]   ;;  %vm2270_vm6 = vsmask.f32 256 }
  0x39   : > { %v6019_v23 = vld [vmem:[%s7256_s1 + $0x30] sm:$0xff]   ;;  %v6021_v27 = vld [vmem:[%s7256_s1 + $0x38] sm:$0xff]   ;;  %v6023_v35 = vld [vmem:[%s7256_s1 + $0x80] sm:$0xff]   ;;  %vm2768_vm9 = vcmask 1042432   ;;  %vm2769_vm10 = vcmask 1046532   ;;  %s233_s13 = sand.u32 1, %s6280_s19  }
  0x3a   : > { %s6423_s15 = scalar_lea.vmem %s7255_s0, %s5946_s30  ;;  %5349 = vmatpush3.bf16.msra.mxu0 %v6003_v1  ;;  %v6025_v42 = vld [vmem:[%s7256_s1 + $0x88] sm:$0xff]   ;;  %vm6485_vm2 = vmor %vm589_vm0, %vm590_vm1  ;;  %v6026_v51 = vld [vmem:[%s7256_s1 + $0x90] sm:$0xff]   ;;  %s4605_s14 = sshll.u32 %s233_s13, 5 }
  0x3b   : > { %5350 = vmatprep.subr.bf16.mxu0 %v6004_v2  ;;  %v6010_v4 = vld [vmem:[%s6423_s15 + $0x48] ss:$8 sps:$4 sm:$0xff]   ;;  %v6012_v10 = vld [vmem:[%s6423_s15 + $0x58] ss:$8 sps:$4 sm:$0xff]   ;;  %v574_v26 = vld [vmem:[%s6423_s15 + $0x4] sm:$0x1] }
  0x3c   : > { %5362 = vmatprep.mubr.bf16.mxu0 %v6010_v4  ;;  %v6018_v11 = vld [vmem:[%s6423_s15 + $0x68] ss:$8 sps:$4 sm:$0xff]   ;;  %v6020_v14 = vld [vmem:[%s6423_s15 + $0x78] ss:$8 sps:$4 sm:$0xff]   ;;  %v576_v28 = vld [vmem:[%s6423_s15 + $0xc] sm:$0x1] }
  0x3d   : > { %v6022_v15 = vld [vmem:[%s6423_s15] ss:$8 sps:$4 sm:$0xff]   ;;  %v602_v33 = vshll.u32 %v574_v26, 16  ;;  %v616_v34 = vshll.u32 %v576_v28, 16  ;;  %v6024_v36 = vld [vmem:[%s6423_s15 + $0x10] ss:$8 sps:$4 sm:$0xff]   ;;  %vm6799_vm7 = vmand %vm2263_vm3, %vm2264_vm4 }
  0x3e   : > { %5351 = vmatpush3.bf16.msra.mxu0 %v6004_v2  ;;  %v573_v19 = vld [vmem:[%s6423_s15] sm:$0xf]  ;;  %v575_v20 = vld [vmem:[%s6423_s15 + $0x8] sm:$0xf]  ;;  %v577_v43 = vld [vmem:[%s6423_s15 + $0x10] sm:$0xf] }
  0x3f   : > { %5352 = vmatprep.subr.bf16.mxu0 %v6005_v3  ;;  %v593_v21 = vshrl.u32 %v573_v19, 16  ;;  %v596_v22 = vshll.u32 %v573_v19, 16  ;;  %v607_v24 = vshrl.u32 %v575_v20, 16  ;;  %v610_v25 = vshll.u32 %v575_v20, 16  ;;  %v6030_v39 = vld [vmem:[%s6423_s15 + $0x20] ss:$8 sps:$4 sm:$0xff]   ;;  %vm6806_vm8 = vmand %vm2269_vm5, %vm2270_vm6 }
  0x40   : > { %v604_v40 = vrot.slane %v602_v33, 5  ;;  %v618_v41 = vrot.slane %v616_v34, 5  ;;  %v579_v44 = vld [vmem:[%s6423_s15 + $0x18] sm:$0xf]  ;;  %v621_v48 = vshrl.u32 %v577_v43, 16  ;;  %v624_v49 = vshll.u32 %v577_v43, 16  ;;  %vm6924_vm11 = vmor %vm2768_vm9, %vm2769_vm10 }
  0x41   : > { %v595_v29 = vrot.slane %v593_v21, 4  ;;  %v598_v30 = vrot.slane %v596_v22, 5  ;;  %v609_v31 = vrot.slane %v607_v24, 4  ;;  %v612_v32 = vrot.slane %v610_v25, 5  ;;  %v6032_v54 = vld [vmem:[%s6423_s15 + $0x30] ss:$8 sps:$4 sm:$0xff]  }
  0x42   : > { %5353 = vmatpush3.bf16.msra.mxu0 %v6005_v3  ;;  %v635_v50 = vshrl.u32 %v579_v44, 16  ;;  %v6027_v55 = vld [vmem:[%s7256_s1 + $0x98] sm:$0xff]   ;;  %v623_v56 = vrot.slane %v621_v48, 4  ;;  %v638_v57 = vshll.u32 %v579_v44, 16  ;;  %v626_v59 = vrot.slane %v624_v49, 5  ;;  %v6028_v4 = vld [vmem:[%s7256_s1 + $0xa0] sm:$0xff]  }
  0x43   : > { %5354 = vmatprep.subr.bf16.mxu0 %v6006_v5  ;;  %v599_v37 = vor.u32 %v598_v30, %v595_v29  ;;  %v613_v38 = vor.u32 %v612_v32, %v609_v31  ;;  %v581_v61 = vld [vmem:[%s6423_s15 + $0x20] sm:$0xf]  ;;  %v578_v62 = vld [vmem:[%s6423_s15 + $0x14] sm:$0x1]  ;;  %v580_v63 = vld [vmem:[%s6423_s15 + $0x1c] sm:$0x1] }
  0x44   : > { %v637_v60 = vrot.slane %v635_v50, 4  ;;  %v583_v0 = vld [vmem:[%s6423_s15 + $0x28] sm:$0xf]  ;;  %v582_v1 = vld [vmem:[%s6423_s15 + $0x24] sm:$0x1]  ;;  %v640_v2 = vrot.slane %v638_v57, 5 }
  0x45   : > { %v600_v45 = vrot.slane %v599_v37, 4  ;;  %v614_v46 = vrot.slane %v613_v38, 4  ;;  %v649_v3 = vshrl.u32 %v581_v61, 16  ;;  %v587_v21 = vld [vmem:[%s6423_s15 + $0x38] sm:$0xf]  ;;  %v6031_v30 = vld [vmem:[%s7256_s1 + $0xb0] sm:$0xff]  }
  0x46   : > { %5355 = vmatpush3.bf16.msra.mxu0 %v6006_v5  ;;  %v652_v5 = vshll.u32 %v581_v61, 16  ;;  %v691_v28 = vshrl.u32 %v587_v21, 16  ;;  %v694_v29 = vshll.u32 %v587_v21, 16  ;;  %v6033_v38 = vld [vmem:[%s7256_s1 + $0xb8] sm:$0xff]   ;;  %v4757_v21 = vld [vmem:[%s6423_s15 + $0x94] sm:$0x1] }
  0x47   : > { %5356 = vmatprep.subr.bf16.mxu0 %v6007_v6  ;;  %v605_v52 = vsel %vm6485_vm2, %v600_v45, %v604_v40  ;;  %v619_v53 = vsel %vm6485_vm2, %v614_v46, %v618_v41  ;;  %v6184_v47 = vld [vmem:[#allocation3 + $0x228] sm:$0xff]   ;;  %s7197_s16 = scalar_lea.vmem [#allocation6], %s4605_s14  ;;  %s5094_s23 = sshll.u32 %s6348_s22, 9 }
  0x48   : > { %v4672_v58 = vcombine.low %v605_v52, %v619_v53  ;;  %v693_v40 = vrot.slane %v691_v28, 4  ;;  %v696_v41 = vrot.slane %v694_v29, 5  ;;  %v1226_v28 = vshll.u32 %v4757_v21, 16  ;;  %v4760_v29 = vld [vmem:[%s6423_s15 + $0xa0] sm:$0xf]  ;;  %s4525_s17 = sshll.u32 %s7197_s16, 4  ;;  %s7208_s6 = scalar_lea.hbm %s7260_s5, %s5094_s23  ;;  %s7203_s17 = int_to_ptr.vmem [resolvable:$true] %s4525_s17 }
  0x49   : > { %s7214_s9 = scalar_lea.sflag [#allocation5], %s233_s13  ;;  %s6222_s22 = scalar_lea.vmem %s7203_s17, 512 }
  0x4a   : > { %5357 = vmatpush3.bf16.msra.mxu0 %v6007_v6  ;;  %v663_v6 = vshrl.u32 %v583_v0, 16  ;;  %v697_v49 = vor.u32 %v696_v41, %v693_v40  ;;  %v1248_v41 = vshll.u32 %v4760_v29, 16  ;;  %p6223_p6 = scmp.ne.s32.totalorder %s7203_s17, %s6222_s22  ;;  %p7279_p9 = scmp.ne.s32.totalorder %s7264_s28, 0 }
  0x4b   : > { %5358 = vmatprep.subr.bf16.mxu0 %v6008_v7  ;;  %s6294_s10 = smov [#allocation6]  }
  0x4c   : > { %p6224_p10 = pnand %p6223_p6, %p7279_p9  ;;  %s6226_s8 = sshll.u32 %s6294_s10, 4  ;;  %s6227_s8 = int_to_ptr.vmem [resolvable:$false] %s6226_s8 }
  0x4d   : > { %s6228_s11 = scalar_lea.vmem %s6227_s8, 1024  ;;  %p6229_p2 = scmp.lt.s32.totalorder %s7203_s17, %s6227_s8 }
  0x4e   : > { %5359 = vmatpush3.bf16.msra.mxu0 %v6008_v7  ;;  %v666_v7 = vshll.u32 %v583_v0, 16  ;;  %v6037_v0 = vld [vmem:[%s7256_s1 + $0xd8] sm:$0xff]   ;;  %p6225_p12 = pneg %p6224_p10  ;;  %p6230_p3 = scmp.lt.s32.totalorder %s6228_s11, %s6222_s22 }
  0x4f   : > { %5360 = vmatprep.subr.bf16.mxu0 %v6009_v8 }
  0x50   : > { %v668_v19 = vrot.slane %v666_v7, 5  ;;  %v6043_v7 = vld [vmem:[%s7256_s1 + $0x100] sm:$0xff]   ;;  %p6231_p4 = por %p6230_p3, %p6229_p2 }
  0x52   : > { %5361 = vmatpush3.bf16.msra.mxu0 %v6009_v8  ;;  %v584_v8 = vld [vmem:[%s6423_s15 + $0x2c] sm:$0x1]  ;;  %p6232_p7 = pnand %p6231_p4, %p6225_p12 }
  0x53   : > { %5370 = vmatprep.subr.bf16.mxu0 %v6011_v9  ;;  %v672_v20 = vshll.u32 %v584_v8, 16  ;;  %v6044_v8 = vld [vmem:[%s6423_s15 + $0xa0] ss:$8 sps:$4 sm:$0xff]  }
  0x55   : > { %5363 = vmatmul.mubr.bf16.vlgmr.msra.gmra.mrb[0].mxu0 %v6012_v10  ;;  %v644_v10 = vshll.u32 %v580_v63, 16  ;;  %v674_v34 = vrot.slane %v672_v20, 5  ;;  %v6036_v63 = vld [vmem:[%s7256_s1 + $0xd0] sm:$0xff]  }
  0x56   : > { %5371 = vmatpush3.bf16.msra.mxu0 %v6011_v9  ;;  %5366 = vmatprep.mubr.bf16.mxu0 %v6018_v11  ;;  %v630_v9 = vshll.u32 %v578_v62, 16  ;;  %v585_v11 = vld [vmem:[%s6423_s15 + $0x30] sm:$0xf] }
  0x57   : > { %5372 = vmatprep.subr.bf16.mxu0 %v6013_v12  ;;  %v677_v22 = vshrl.u32 %v585_v11, 16  ;;  %v646_v25 = vrot.slane %v644_v10, 5  ;;  %v6045_v10 = vld [vmem:[%s7256_s1 + $0x108] sm:$0xff]  }
  0x58   : > { %v632_v24 = vrot.slane %v630_v9, 5  ;;  %v6050_v9 = vld [vmem:[%s6423_s15 + $0xb0] ss:$8 sps:$4 sm:$0xff]  }
  0x5a   : > { %5373 = vmatpush3.bf16.msra.mxu0 %v6013_v12  ;;  %v6029_v12 = vld [vmem:[%s7256_s1 + $0xa8] sm:$0xff]  }
  0x5b   : > { %5374 = vmatprep.subr.bf16.mxu0 %v6014_v13 }
  0x5d   : > { %5367 = vmatmul.mubr.bf16.gmra.mrb[4].mxu0 %v6020_v14  ;;  %v641_v14 = vor.u32 %v640_v2, %v637_v60  ;;  %v6035_v60 = vld [vmem:[%s7256_s1 + $0xc8] sm:$0xff]   ;;  %v6042_v2 = vld [vmem:[%s6423_s15 + $0x90] ss:$8 sps:$4 sm:$0xff]  }
  0x5e   : > { %5375 = vmatpush3.bf16.msra.mxu0 %v6014_v13  ;;  %5386 = vmatprep.mubr.bf16.mxu0 %v6022_v15  ;;  %v627_v13 = vor.u32 %v626_v59, %v623_v56  ;;  %v651_v15 = vrot.slane %v649_v3, 4  ;;  %v6038_v3 = vld [vmem:[%s7256_s1 + $0xe0] sm:$0xff]  }
  0x5f   : > { %5376 = vmatprep.subr.bf16.mxu0 %v6015_v16 }
  0x60   : > { %v628_v26 = vrot.slane %v627_v13, 4  ;;  %v6047_v13 = vld [vmem:[%s7256_s1 + $0x118] sm:$0xff]  }
  0x62   : > { %5377 = vmatpush3.bf16.msra.mxu0 %v6015_v16  ;;  %v658_v16 = vshll.u32 %v582_v1, 16  ;;  %v633_v44 = vsel %vm6485_vm2, %v628_v26, %v632_v24 }
  0x63   : > { %5378 = vmatprep.subr.bf16.mxu0 %v6016_v17 }
  0x64   : > { %v660_v32 = vrot.slane %v658_v16, 5  ;;  %v4756_v16 = vld [vmem:[%s6423_s15 + $0x90] sm:$0xf] }
  0x65   : > { %v1220_v20 = vshll.u32 %v4756_v16, 16 }
  0x66   : > { %5379 = vmatpush3.bf16.msra.mxu0 %v6016_v17  ;;  %v654_v17 = vrot.slane %v652_v5, 5  ;;  %v6040_v5 = vld [vmem:[%s7256_s1 + $0xf0] sm:$0xff]  }
  0x67   : > { %5380 = vmatprep.subr.bf16.mxu0 %v6017_v18 }
  0x68   : > { %v655_v31 = vor.u32 %v654_v17, %v651_v15  ;;  %v6048_v15 = vld [vmem:[%s7256_s1 + $0x120] sm:$0xff]   ;;  %v6049_v17 = vld [vmem:[%s7256_s1 + $0x128] sm:$0xff]  }
  0x6a   : > { %5381 = vmatpush3.bf16.msra.mxu0 %v6017_v18  ;;  %v665_v18 = vrot.slane %v663_v6, 4  ;;  %v6041_v6 = vld [vmem:[%s7256_s1 + $0xf8] sm:$0xff]  }
  0x6b   : > { %5382 = vmatprep.subr.bf16.mxu0 %v6019_v23 }
  0x6c   : > { %v669_v33 = vor.u32 %v668_v19, %v665_v18  ;;  %v4758_v18 = vld [vmem:[%s6423_s15 + $0x98] sm:$0xf]  ;;  %v1217_v19 = vshrl.u32 %v4756_v16, 16  ;;  %v4771_v16 = vld [vmem:[%s6423_s15 + $0xcc] sm:$0x1] }
  0x6d   : > { %v1231_v24 = vshrl.u32 %v4758_v18, 16 }
  0x6e   : > { %5383 = vmatpush3.bf16.msra.mxu0 %v6019_v23  ;;  %v680_v23 = vshll.u32 %v585_v11, 16  ;;  %v670_v43 = vrot.slane %v669_v33, 4  ;;  %v6046_v11 = vld [vmem:[%s7256_s1 + $0x110] sm:$0xff]   ;;  %v1219_v26 = vrot.slane %v1217_v19, 4  ;;  %v6053_v33 = vld [vmem:[%s7256_s1 + $0x138] sm:$0xff]  }
  0x6f   : > { %5384 = vmatprep.subr.bf16.mxu0 %v6021_v27 }
  0x70   : > { %v682_v37 = vrot.slane %v680_v23, 5  ;;  %v675_v53 = vsel %vm6485_vm2, %v670_v43, %v674_v34  ;;  %v4759_v23 = vld [vmem:[%s6423_s15 + $0x9c] sm:$0x1]  ;;  %v4766_v43 = vld [vmem:[%s6423_s15 + $0xb8] sm:$0xf] }
  0x72   : > { %5385 = vmatpush3.bf16.msra.mxu0 %v6021_v27  ;;  %v642_v27 = vrot.slane %v641_v14, 4  ;;  %v6054_v14 = vld [vmem:[%s6423_s15 + $0xd8] ss:$8 sps:$4 sm:$0xff]  }
  0x73   : > { %5394 = vmatprep.subr.bf16.mxu0 %v6023_v35 }
  0x74   : > { %v647_v46 = vsel %vm6485_vm2, %v642_v27, %v646_v25  ;;  %v1234_v25 = vshll.u32 %v4758_v18, 16  ;;  %v1222_v27 = vrot.slane %v1220_v20, 5 }
  0x75   : > { %5387 = vmatmul.mubr.bf16.vlgmr.msra.gmra.mrb[0].mxu0 %v6024_v36  ;;  %v679_v36 = vrot.slane %v677_v22, 4  ;;  %v6051_v22 = vld [vmem:[%s7256_s1 + $0x130] sm:$0xff]  }
  0x76   : > { %5395 = vmatpush3.bf16.msra.mxu0 %v6023_v35  ;;  %5390 = vmatprep.mubr.bf16.mxu0 %v6030_v39  ;;  %v586_v35 = vld [vmem:[%s6423_s15 + $0x34] sm:$0x1]  ;;  %v588_v39 = vld [vmem:[%s6423_s15 + $0x3c] sm:$0x1]  ;;  %v1223_v34 = vor.u32 %v1222_v27, %v1219_v26 }
  0x77   : > { %5396 = vmatprep.subr.bf16.mxu0 %v6025_v42  ;;  %v686_v45 = vshll.u32 %v586_v35, 16  ;;  %v683_v48 = vor.u32 %v682_v37, %v679_v36  ;;  %v700_v50 = vshll.u32 %v588_v39, 16  ;;  %v4762_v35 = vld [vmem:[%s6423_s15 + $0xa8] sm:$0xf]  ;;  %v1245_v36 = vshrl.u32 %v4760_v29, 16  ;;  %v6055_v37 = vld [vmem:[%s7256_s1 + $0x140] sm:$0xff]  }
  0x78   : > { %v1324_v29 = vshll.u32 %v4771_v16, 16  ;;  %v4874_v16 = vld [vmem:[%s6423_s15 + $0x10] sm:$0xf] }
  0x79   : > { %v684_v57 = vrot.slane %v683_v48, 4  ;;  %v702_v59 = vrot.slane %v700_v50, 5  ;;  %v4768_v48 = vld [vmem:[%s6423_s15 + $0xc0] sm:$0xf]  ;;  %v1224_v50 = vrot.slane %v1223_v34, 4 }
  0x7a   : > { %5397 = vmatpush3.bf16.msra.mxu0 %v6025_v42  ;;  %v656_v42 = vrot.slane %v655_v31, 4  ;;  %v1236_v31 = vrot.slane %v1234_v25, 5  ;;  %v6064_v25 = vld [vmem:[%s6423_s15 + $0x108] ss:$8 sps:$4 sm:$0xff]  }
  0x7b   : > { %5398 = vmatprep.subr.bf16.mxu0 %v6026_v51 }
  0x7c   : > { %v661_v52 = vsel %vm6485_vm2, %v656_v42, %v660_v32  ;;  %v1240_v32 = vshll.u32 %v4759_v23, 16  ;;  %v4764_v42 = vld [vmem:[%s6423_s15 + $0xb0] sm:$0xf] }
  0x7d   : > { %5391 = vmatmul.mubr.bf16.gmra.mrb[4].mxu0 %v6032_v54  ;;  %v4673_v54 = vcombine.low %v633_v44, %v647_v46  ;;  %v4674_v56 = vcombine.low %v661_v52, %v675_v53  ;;  %v6056_v44 = vld [vmem:[%s6423_s15 + $0xe8] ss:$8 sps:$4 sm:$0xff]   ;;  %v1262_v46 = vshll.u32 %v4762_v35, 16  ;;  %v1247_v52 = vrot.slane %v1245_v36, 4 }
  0x7e   : > { %5399 = vmatpush3.bf16.msra.mxu0 %v6026_v51  ;;  %5410 = vmatprep.mubr.bf16.mxu0 %v4672_v58  ;;  %v6034_v51 = vld [vmem:[%s7256_s1 + $0xc0] sm:$0xff]   ;;  %v698_v58 = vrot.slane %v697_v49, 4  ;;  %v1242_v40 = vrot.slane %v1240_v32, 5  ;;  %v4770_v53 = vld [vmem:[%s6423_s15 + $0xc8] sm:$0xf] }
  0x7f   : > { %5400 = vmatprep.subr.bf16.mxu0 %v6027_v55  ;;  %v6062_v49 = vld [vmem:[%s6423_s15 + $0xf8] ss:$8 sps:$4 sm:$0xff]  }
  0x80   : > { %v703_v62 = vsel %vm6485_vm2, %v698_v58, %v702_v59  ;;  %v1287_v58 = vshrl.u32 %v4766_v43, 16  ;;  %v1290_v59 = vshll.u32 %v4766_v43, 16 }
  0x82   : > { %5401 = vmatpush3.bf16.msra.mxu0 %v6027_v55  ;;  %v688_v55 = vrot.slane %v686_v45, 5  ;;  %v1259_v45 = vshrl.u32 %v4762_v35, 16 }
  0x83   : > { %5402 = vmatprep.subr.bf16.mxu0 %v6028_v4 }
  0x84   : > { %v689_v61 = vsel %vm6485_vm2, %v684_v57, %v688_v55  ;;  %v4763_v55 = vld [vmem:[%s6423_s15 + $0xac] sm:$0x1]  ;;  %v1276_v57 = vshll.u32 %v4764_v42, 16 }
  0x85   : > { %v4675_v1 = vcombine.low %v689_v61, %v703_v62  ;;  %v1250_v61 = vrot.slane %v1248_v41, 5  ;;  %v1301_v62 = vshrl.u32 %v4768_v48, 16 }
  0x86   : > { %5403 = vmatpush3.bf16.msra.mxu0 %v6028_v4  ;;  %v6039_v4 = vld [vmem:[%s7256_s1 + $0xe8] sm:$0xff]  }
  0x87   : > { %5404 = vmatprep.subr.bf16.mxu0 %v6029_v12 }
  0x8a   : > { %5405 = vmatpush3.bf16.msra.mxu0 %v6029_v12  ;;  %v6052_v12 = vld [vmem:[%s6423_s15 + $0xc0] ss:$8 sps:$4 sm:$0xff]  }
  0x8b   : > { %5406 = vmatprep.subr.bf16.mxu0 %v6031_v30 }
  0x8e   : > { %5407 = vmatpush3.bf16.msra.mxu0 %v6031_v30  ;;  %v1233_v30 = vrot.slane %v1231_v24, 4 }
  0x8f   : > { %5408 = vmatprep.subr.bf16.mxu0 %v6033_v38 }
  0x90   : > { %v1237_v39 = vor.u32 %v1236_v31, %v1233_v30 }
  0x92   : > { %5409 = vmatpush3.bf16.msra.mxu0 %v6033_v38  ;;  %v6596_v38 = vrot.slane %v1226_v28, 5 }
  0x93   : > { %5418 = vmatprep.subr.bf16.mxu0 %v6034_v51 }
  0x95   : > { %5411 = vmatmul.mubr.bf16.vlgmr.msra.gmra.mrb[0].mxu0 %v4673_v54  ;;  %v6057_v54 = vld [vmem:[%s7256_s1 + $0x148] sm:$0xff]  }
  0x96   : > { %5419 = vmatpush3.bf16.msra.mxu0 %v6034_v51  ;;  %5414 = vmatprep.mubr.bf16.mxu0 %v4674_v56  ;;  %v4761_v51 = vld [vmem:[%s6423_s15 + $0xa4] sm:$0x1]  ;;  %v1273_v56 = vshrl.u32 %v4764_v42, 16 }
  0x97   : > { %5420 = vmatprep.subr.bf16.mxu0 %v6035_v60 }
  0x9a   : > { %5421 = vmatpush3.bf16.msra.mxu0 %v6035_v60  ;;  %v1238_v60 = vrot.slane %v1237_v39, 4 }
  0x9b   : > { %5422 = vmatprep.subr.bf16.mxu0 %v6036_v63 }
  0x9c   : > { %v1243_v19 = vsel %vm6485_vm2, %v1238_v60, %v1242_v40  ;;  %v6060_v40 = vld [vmem:[%s7256_s1 + $0x160] sm:$0xff]  }
  0x9d   : > { %5415 = vmatmul.mubr.bf16.gmra.mrb[4].mxu0 %v4675_v1  ;;  %v1264_v1 = vrot.slane %v1262_v46, 5 }
  0x9e   : > { %5423 = vmatpush3.bf16.msra.mxu0 %v6036_v63  ;;  %5434 = vmatprep.mubr.bf16.mxu0 %v6042_v2  ;;  %v1304_v63 = vshll.u32 %v4768_v48, 16  ;;  %v1315_v2 = vshrl.u32 %v4770_v53, 16  ;;  %v6061_v48 = vld [vmem:[%s7256_s1 + $0x168] sm:$0xff]  }
  0x9f   : > { %5424 = vmatprep.subr.bf16.mxu0 %v6037_v0 }
  0xa0   : > { %v1306_v18 = vrot.slane %v1304_v63, 5  ;;  %v1317_v21 = vrot.slane %v1315_v2, 4  ;;  %v6074_v63 = vld [vmem:[%s6423_s15 + $0x8] ss:$8 sps:$4 sm:$0xff]  }
  0xa1   : > { %v6071_v2 = vld [vmem:[%s7256_s1 + $0x1a8] sm:$0xff]  }
  0xa2   : > { %5425 = vmatpush3.bf16.msra.mxu0 %v6037_v0  ;;  %v1261_v0 = vrot.slane %v1259_v45, 4 }
  0xa3   : > { %5426 = vmatprep.subr.bf16.mxu0 %v6038_v3 }
  0xa4   : > { %v1265_v20 = vor.u32 %v1264_v1, %v1261_v0  ;;  %v6069_v0 = vld [vmem:[%s7256_s1 + $0x198] sm:$0xff]   ;;  %v6070_v1 = vld [vmem:[%s7256_s1 + $0x1a0] sm:$0xff]  }
  0xa6   : > { %5427 = vmatpush3.bf16.msra.mxu0 %v6038_v3  ;;  %v1318_v3 = vshll.u32 %v4770_v53, 16  ;;  %v1266_v35 = vrot.slane %v1265_v20, 4  ;;  %v1855_v20 = vshrl.u32 %v4874_v16, 16 }
  0xa7   : > { %5428 = vmatprep.subr.bf16.mxu0 %v6039_v4 }
  0xaa   : > { %5429 = vmatpush3.bf16.msra.mxu0 %v6039_v4  ;;  %v1254_v4 = vshll.u32 %v4761_v51, 16  ;;  %v6066_v51 = vld [vmem:[%s7256_s1 + $0x180] sm:$0xff]  }
  0xab   : > { %5430 = vmatprep.subr.bf16.mxu0 %v6040_v5 }
  0xac   : > { %v1256_v31 = vrot.slane %v1254_v4, 5  ;;  %v6073_v4 = vld [vmem:[%s7256_s1 + $0x1b8] sm:$0xff]  }
  0xae   : > { %5431 = vmatpush3.bf16.msra.mxu0 %v6040_v5  ;;  %v1268_v5 = vshll.u32 %v4763_v55, 16 }
  0xaf   : > { %5432 = vmatprep.subr.bf16.mxu0 %v6041_v6 }
  0xb0   : > { %v1270_v32 = vrot.slane %v1268_v5, 5  ;;  %v6075_v5 = vld [vmem:[%s7256_s1 + $0x1c0] sm:$0xff]  }
  0xb2   : > { %5433 = vmatpush3.bf16.msra.mxu0 %v6041_v6  ;;  %v4765_v6 = vld [vmem:[%s6423_s15 + $0xb4] sm:$0x1]  ;;  %v1271_v53 = vsel %vm6485_vm2, %v1266_v35, %v1270_v32  ;;  %v6094_v35 = vld [vmem:[%s6423_s15 + $0x70] ss:$8 sps:$4 sm:$0xff]  }
  0xb3   : > { %5442 = vmatprep.subr.bf16.mxu0 %v6043_v7  ;;  %v1282_v23 = vshll.u32 %v4765_v6, 16  ;;  %v6076_v6 = vld [vmem:[%s6423_s15 + $0x18] ss:$8 sps:$4 sm:$0xff]  }
  0xb5   : > { %5435 = vmatmul.mubr.bf16.vlgmr.msra.gmra.mrb[0].mxu0 %v6044_v8  ;;  %v6058_v8 = vld [vmem:[%s7256_s1 + $0x150] sm:$0xff]  }
  0xb6   : > { %5443 = vmatpush3.bf16.msra.mxu0 %v6043_v7  ;;  %5438 = vmatprep.mubr.bf16.mxu0 %v6050_v9  ;;  %v4767_v7 = vld [vmem:[%s6423_s15 + $0xbc] sm:$0x1]  ;;  %v1275_v9 = vrot.slane %v1273_v56, 4 }
  0xb7   : > { %5444 = vmatprep.subr.bf16.mxu0 %v6045_v10  ;;  %v1296_v24 = vshll.u32 %v4767_v7, 16  ;;  %v6082_v7 = vld [vmem:[%s6423_s15 + $0x28] ss:$8 sps:$4 sm:$0xff]  }
  0xb9   : > { %v1298_v39 = vrot.slane %v1296_v24, 5 }
  0xba   : > { %5445 = vmatpush3.bf16.msra.mxu0 %v6045_v10  ;;  %v1278_v10 = vrot.slane %v1276_v57, 5  ;;  %v6067_v57 = vld [vmem:[%s7256_s1 + $0x188] sm:$0xff]  }
  0xbb   : > { %5446 = vmatprep.subr.bf16.mxu0 %v6046_v11 }
  0xbc   : > { %v1279_v26 = vor.u32 %v1278_v10, %v1275_v9  ;;  %v6078_v9 = vld [vmem:[%s7256_s1 + $0x1d0] sm:$0xff]   ;;  %v6084_v10 = vld [vmem:[%s6423_s15 + $0x38] ss:$8 sps:$4 sm:$0xff]  }
  0xbd   : > { %5439 = vmatmul.mubr.bf16.gmra.mrb[4].mxu0 %v6052_v12  ;;  %v1292_v12 = vrot.slane %v1290_v59, 5 }
  0xbe   : > { %5447 = vmatpush3.bf16.msra.mxu0 %v6046_v11  ;;  %5458 = vmatprep.mubr.bf16.mxu0 %v6054_v14  ;;  %v1289_v11 = vrot.slane %v1287_v58, 4  ;;  %v1229_v14 = vsel %vm6485_vm2, %v1224_v50, %v6596_v38  ;;  %v1284_v38 = vrot.slane %v1282_v23, 5  ;;  %v1280_v41 = vrot.slane %v1279_v26, 4  ;;  %v6065_v50 = vld [vmem:[%s7256_s1 + $0x178] sm:$0xff]  }
  0xbf   : > { %5448 = vmatprep.subr.bf16.mxu0 %v6047_v13  ;;  %v4788_v30 = vcombine.low %v1229_v14, %v1243_v19  ;;  %v6081_v14 = vld [vmem:[%s7256_s1 + $0x1e8] sm:$0xff]  }
  0xc0   : > { %v1293_v27 = vor.u32 %v1292_v12, %v1289_v11  ;;  %v6086_v11 = vld [vmem:[%s6423_s15 + $0x50] ss:$8 sps:$4 sm:$0xff]  }
  0xc1   : > { %v6079_v12 = vld [vmem:[%s7256_s1 + $0x1d8] sm:$0xff]  }
  0xc2   : > { %5449 = vmatpush3.bf16.msra.mxu0 %v6047_v13  ;;  %v4769_v13 = vld [vmem:[%s6423_s15 + $0xc4] sm:$0x1]  ;;  %v1294_v42 = vrot.slane %v1293_v27, 4  ;;  %v4873_v27 = vld [vmem:[%s6423_s15 + $0xc] sm:$0x1] }
  0xc3   : > { %5450 = vmatprep.subr.bf16.mxu0 %v6048_v15  ;;  %v1310_v28 = vshll.u32 %v4769_v13, 16  ;;  %v6080_v13 = vld [vmem:[%s7256_s1 + $0x1e0] sm:$0xff]  }
  0xc4   : > { %v1299_v55 = vsel %vm6485_vm2, %v1294_v42, %v1298_v39 }
  0xc5   : > { %v1312_v43 = vrot.slane %v1310_v28, 5  ;;  %v4875_v28 = vld [vmem:[%s6423_s15 + $0x14] sm:$0x1] }
  0xc6   : > { %5451 = vmatpush3.bf16.msra.mxu0 %v6048_v15  ;;  %v1251_v15 = vor.u32 %v1250_v61, %v1247_v52  ;;  %v6068_v61 = vld [vmem:[%s7256_s1 + $0x190] sm:$0xff]  }
  0xc7   : > { %5452 = vmatprep.subr.bf16.mxu0 %v6049_v17 }
  0xc8   : > { %v1252_v34 = vrot.slane %v1251_v15, 4  ;;  %v4872_v15 = vld [vmem:[%s6423_s15 + $0x8] sm:$0xf] }
  0xc9   : > { %v1844_v19 = vshll.u32 %v4872_v15, 16 }
  0xca   : > { %5453 = vmatpush3.bf16.msra.mxu0 %v6049_v17  ;;  %v1303_v17 = vrot.slane %v1301_v62, 4  ;;  %v1257_v52 = vsel %vm6485_vm2, %v1252_v34, %v1256_v31  ;;  %v1850_v31 = vshll.u32 %v4873_v27, 16  ;;  %v6088_v34 = vld [vmem:[%s6423_s15 + $0x60] ss:$8 sps:$4 sm:$0xff]  }
  0xcb   : > { %5454 = vmatprep.subr.bf16.mxu0 %v6051_v22  ;;  %v4789_v56 = vcombine.low %v1257_v52, %v1271_v53  ;;  %v1846_v24 = vrot.slane %v1844_v19, 5 }
  0xcc   : > { %v1307_v36 = vor.u32 %v1306_v18, %v1303_v17  ;;  %v6083_v17 = vld [vmem:[%s7256_s1 + $0x1f0] sm:$0xff]   ;;  %v1841_v18 = vshrl.u32 %v4872_v15, 16 }
  0xce   : > { %5455 = vmatpush3.bf16.msra.mxu0 %v6051_v22  ;;  %v1320_v22 = vrot.slane %v1318_v3, 5  ;;  %v1308_v45 = vrot.slane %v1307_v36, 4  ;;  %v6072_v3 = vld [vmem:[%s7256_s1 + $0x1b0] sm:$0xff]   ;;  %v1843_v23 = vrot.slane %v1841_v18, 4  ;;  %v6089_v36 = vld [vmem:[%s7256_s1 + $0x208] sm:$0xff]  }
  0xcf   : > { %5456 = vmatprep.subr.bf16.mxu0 %v6053_v33 }
  0xd0   : > { %v1313_v59 = vsel %vm6485_vm2, %v1308_v45, %v1312_v43 }
  0xd2   : > { %5457 = vmatpush3.bf16.msra.mxu0 %v6053_v33  ;;  %v6059_v33 = vld [vmem:[%s7256_s1 + $0x158] sm:$0xff]  }
  0xd3   : > { %5466 = vmatprep.subr.bf16.mxu0 %v6055_v37 }
  0xd5   : > { %5459 = vmatmul.mubr.bf16.vlgmr.msra.gmra.mrb[0].mxu0 %v6056_v44  ;;  %v1326_v44 = vrot.slane %v1324_v29, 5  ;;  %v6087_v29 = vld [vmem:[%s7256_s1 + $0x200] sm:$0xff]  }
  0xd6   : > { %5467 = vmatpush3.bf16.msra.mxu0 %v6055_v37  ;;  %5462 = vmatprep.mubr.bf16.mxu0 %v6062_v49  ;;  %v1321_v37 = vor.u32 %v1320_v22, %v1317_v21  ;;  %v6063_v49 = vld [vmem:[%s7256_s1 + $0x170] sm:$0xff]   ;;  %v1858_v21 = vshll.u32 %v4874_v16, 16  ;;  %v6085_v22 = vld [vmem:[%s7256_s1 + $0x1f8] sm:$0xff]  }
  0xd7   : > { %5468 = vmatprep.subr.bf16.mxu0 %v6057_v54 }
  0xd8   : > { %v1322_v46 = vrot.slane %v1321_v37, 4  ;;  %v1860_v26 = vrot.slane %v1858_v21, 5 }
  0xda   : > { %5469 = vmatpush3.bf16.msra.mxu0 %v6057_v54  ;;  %v1285_v54 = vsel %vm6485_vm2, %v1280_v41, %v1284_v38  ;;  %v1327_v60 = vsel %vm6485_vm2, %v1322_v46, %v1326_v44  ;;  %v1852_v38 = vrot.slane %v1850_v31, 5  ;;  %v6090_v41 = vld [vmem:[%s7256_s1 + $0x210] sm:$0xff]   ;;  %v6095_v44 = vld [vmem:[%s6423_s15 + $0x80] ss:$8 sps:$4 sm:$0xff]   ;;  %v4876_v46 = vld [vmem:[%s6423_s15 + $0x18] sm:$0xf] }
  0xdb   : > { %5470 = vmatprep.subr.bf16.mxu0 %v6058_v8  ;;  %v4790_v58 = vcombine.low %v1285_v54, %v1299_v55  ;;  %v4791_v62 = vcombine.low %v1313_v59, %v1327_v60  ;;  %v1869_v52 = vshrl.u32 %v4876_v46, 16  ;;  %v1872_v53 = vshll.u32 %v4876_v46, 16 }
  0xdd   : > { %5463 = vmatmul.mubr.bf16.gmra.mrb[4].mxu0 %v6064_v25  ;;  %v1857_v25 = vrot.slane %v1855_v20, 4  ;;  %v6096_v20 = vld [vmem:[%s7256_s1 + $0x230] sm:$0xff]  }
  0xde   : > { %5471 = vmatpush3.bf16.msra.mxu0 %v6058_v8  ;;  %5482 = vmatprep.mubr.bf16.mxu0 %v4788_v30  ;;  %v6077_v8 = vld [vmem:[%s7256_s1 + $0x1c8] sm:$0xff]   ;;  %v1847_v30 = vor.u32 %v1846_v24, %v1843_v23 }
  0xdf   : > { %5472 = vmatprep.subr.bf16.mxu0 %v6059_v33  ;;  %v1861_v32 = vor.u32 %v1860_v26, %v1857_v25  ;;  %v6097_v25 = vld [vmem:[%s7256_s1 + $0x238] sm:$0xff]  }
  0xe0   : > { %v1848_v37 = vrot.slane %v1847_v30, 4  ;;  %v4885_v30 = vld [vmem:[%s6423_s15 + $0x3c] sm:$0x1] }
  0xe1   : > { %v1862_v39 = vrot.slane %v1861_v32, 4 }
  0xe2   : > { %5473 = vmatpush3.bf16.msra.mxu0 %v6059_v33  ;;  %v1864_v33 = vshll.u32 %v4875_v28, 16  ;;  %v1853_v42 = vsel %vm6485_vm2, %v1848_v37, %v1852_v38 }
  0xe3   : > { %5474 = vmatprep.subr.bf16.mxu0 %v6060_v40 }
  0xe6   : > { %5475 = vmatpush3.bf16.msra.mxu0 %v6060_v40  ;;  %v1866_v40 = vrot.slane %v1864_v33, 5 }
  0xe7   : > { %5476 = vmatprep.subr.bf16.mxu0 %v6061_v48 }
  0xe8   : > { %v1867_v43 = vsel %vm6485_vm2, %v1862_v39, %v1866_v40  ;;  %v4887_v39 = vld [vmem:[%s6423_s15 + $0x44] sm:$0x1] }
  0xe9   : > { %v4904_v45 = vcombine.low %v1853_v42, %v1867_v43 }
  0xea   : > { %5477 = vmatpush3.bf16.msra.mxu0 %v6061_v48  ;;  %v4878_v48 = vld [vmem:[%s6423_s15 + $0x20] sm:$0xf] }
  0xeb   : > { %5478 = vmatprep.subr.bf16.mxu0 %v6063_v49  ;;  %v1883_v54 = vshrl.u32 %v4878_v48, 16  ;;  %v1886_v55 = vshll.u32 %v4878_v48, 16 }
  0xee   : > { %5479 = vmatpush3.bf16.msra.mxu0 %v6063_v49  ;;  %v6091_v49 = vld [vmem:[%s7256_s1 + $0x218] sm:$0xff]  }
  0xef   : > { %5480 = vmatprep.subr.bf16.mxu0 %v6065_v50 }
  0xf2   : > { %5481 = vmatpush3.bf16.msra.mxu0 %v6065_v50  ;;  %v4880_v50 = vld [vmem:[%s6423_s15 + $0x28] sm:$0xf] }
  0xf3   : > { %5490 = vmatprep.subr.bf16.mxu0 %v6066_v51 }
  0xf5   : > { %5483 = vmatmul.mubr.bf16.vlgmr.msra.gmra.mrb[0].mxu0 %v4789_v56  ;;  %v6092_v56 = vld [vmem:[%s7256_s1 + $0x220] sm:$0xff]  }
  0xf6   : > { %5491 = vmatpush3.bf16.msra.mxu0 %v6066_v51  ;;  %5486 = vmatprep.mubr.bf16.mxu0 %v4790_v58  ;;  %v4882_v51 = vld [vmem:[%s6423_s15 + $0x30] sm:$0xf]  ;;  %v1900_v58 = vshll.u32 %v4880_v50, 16 }
  0xf7   : > { %5492 = vmatprep.subr.bf16.mxu0 %v6067_v57  ;;  %v1911_v59 = vshrl.u32 %v4882_v51, 16  ;;  %v1914_v60 = vshll.u32 %v4882_v51, 16 }
  0xfa   : > { %5493 = vmatpush3.bf16.msra.mxu0 %v6067_v57  ;;  %v1897_v57 = vshrl.u32 %v4880_v50, 16 }
  0xfb   : > { %5494 = vmatprep.subr.bf16.mxu0 %v6068_v61 }
  0xfd   : > { %5487 = vmatmul.mubr.bf16.gmra.mrb[4].mxu0 %v4791_v62  ;;  %v1871_v62 = vrot.slane %v1869_v52, 4 }
  0xfe   : > { %5495 = vmatpush3.bf16.msra.mxu0 %v6068_v61  ;;  %5506 = vmatprep.mubr.bf16.mxu0 %v6074_v63  ;;  %v6093_v61 = vld [vmem:[%s7256_s1 + $0x228] sm:$0xff]   ;;  %v1874_v63 = vrot.slane %v1872_v53, 5 }
  0xff   : > { %5496 = vmatprep.subr.bf16.mxu0 %v6069_v0 }
 0x102   : > { %5497 = vmatpush3.bf16.msra.mxu0 %v6069_v0  ;;  %v1885_v0 = vrot.slane %v1883_v54, 4 }
 0x103   : > { %5498 = vmatprep.subr.bf16.mxu0 %v6070_v1 }
 0x106   : > { %5499 = vmatpush3.bf16.msra.mxu0 %v6070_v1  ;;  %v1888_v1 = vrot.slane %v1886_v55, 5 }
 0x107   : > { %5500 = vmatprep.subr.bf16.mxu0 %v6071_v2 }
 0x10a   : > { %5501 = vmatpush3.bf16.msra.mxu0 %v6071_v2  ;;  %v4877_v2 = vld [vmem:[%s6423_s15 + $0x1c] sm:$0x1] }
 0x10b   : > { %5502 = vmatprep.subr.bf16.mxu0 %v6072_v3 }
 0x10e   : > { %5503 = vmatpush3.bf16.msra.mxu0 %v6072_v3  ;;  %v4879_v3 = vld [vmem:[%s6423_s15 + $0x24] sm:$0x1] }
 0x10f   : > { %5504 = vmatprep.subr.bf16.mxu0 %v6073_v4  ;;  %v1892_v15 = vshll.u32 %v4879_v3, 16  ;;  %v6761_v3 = vld [vmem:[#allocation3] sm:$0xff]  }
 0x112   : > { %5505 = vmatpush3.bf16.msra.mxu0 %v6073_v4  ;;  %v4884_v4 = vld [vmem:[%s6423_s15 + $0x38] sm:$0xf] }
 0x113   : > { %5514 = vmatprep.subr.bf16.mxu0 %v6075_v5  ;;  %v1925_v16 = vshrl.u32 %v4884_v4, 16 }
 0x115   : > { %5507 = vmatmul.mubr.bf16.vlgmr.msra.gmra.mrb[0].mxu0 %v6076_v6  ;;  %v1902_v6 = vrot.slane %v1900_v58, 5  ;;  %v1927_v31 = vrot.slane %v1925_v16, 4  ;;  %v6098_v58 = vld [vmem:[#allocation3 + $0x40] sm:$0xff]  }
 0x116   : > { %5515 = vmatpush3.bf16.msra.mxu0 %v6075_v5  ;;  %5510 = vmatprep.mubr.bf16.mxu0 %v6082_v7  ;;  %v1899_v5 = vrot.slane %v1897_v57, 4  ;;  %v1913_v7 = vrot.slane %v1911_v59, 4  ;;  %v6293_v59 = vmov 0  }
 0x117   : > { %5516 = vmatprep.subr.bf16.mxu0 %v6077_v8  ;;  %5562 = vmatprep.subr.bf16.mxu1 %v6098_v58  ;;  %2148 = vst [vmem:[#allocation2 + $0x18] sm:$0xf] %v6293_v59  ;;  %2149 = vst [vmem:[#allocation2 + $0x1c] sm:$0x1] %v6293_v59 }
 0x118   : > { %v1903_v21 = vor.u32 %v1902_v6, %v1899_v5  ;;  %2142 = vst [vmem:[#allocation2] sm:$0xf] %v6293_v59  ;;  %2143 = vst [vmem:[#allocation2 + $0x4] sm:$0x1] %v6293_v59  ;;  %5563 = vmatpush3.bf16.msra.mxu1 %v6098_v58  ;;  %v6769_v5 = vld [vmem:[%s7259_s4] ss:$0 sm:$0xff] }
 0x119   : > { %2144 = vst [vmem:[#allocation2 + $0x8] sm:$0xf] %v6293_v59  ;;  %2145 = vst [vmem:[#allocation2 + $0xc] sm:$0x1] %v6293_v59  ;;  %v6774_v6 = vld [vmem:[%s7259_s4 + $0x1] ss:$0 sm:$0xff] }
 0x11a   : > { %5517 = vmatpush3.bf16.msra.mxu0 %v6077_v8  ;;  %v1916_v8 = vrot.slane %v1914_v60, 5  ;;  %2146 = vst [vmem:[#allocation2 + $0x10] sm:$0xf] %v6293_v59  ;;  %2147 = vst [vmem:[#allocation2 + $0x14] sm:$0x1] %v6293_v59  ;;  %v6099_v60 = vld [vmem:[#allocation3 + $0x48] sm:$0xff]  }
 0x11b   : > { %5518 = vmatprep.subr.bf16.mxu0 %v6078_v9  ;;  %2150 = vst [vmem:[#allocation2 + $0x20] sm:$0xf] %v6293_v59  ;;  %2151 = vst [vmem:[#allocation2 + $0x24] sm:$0x1] %v6293_v59  ;;  %5564 = vmatprep.subr.bf16.mxu1 %v6099_v60 }
 0x11c   : > { %v1917_v23 = vor.u32 %v1916_v8, %v1913_v7  ;;  %2152 = vst [vmem:[#allocation2 + $0x28] sm:$0xf] %v6293_v59  ;;  %2153 = vst [vmem:[#allocation2 + $0x2c] sm:$0x1] %v6293_v59  ;;  %5565 = vmatpush3.bf16.msra.mxu1 %v6099_v60 }
 0x11d   : > { %5511 = vmatmul.mubr.bf16.gmra.mrb[4].mxu0 %v6084_v10  ;;  %v4881_v10 = vld [vmem:[%s6423_s15 + $0x2c] sm:$0x1]  ;;  %2154 = vst [vmem:[#allocation2 + $0x30] sm:$0xf] %v6293_v59  ;;  %2155 = vst [vmem:[#allocation2 + $0x34] sm:$0x1] %v6293_v59 }
 0x11e   : > { %5519 = vmatpush3.bf16.msra.mxu0 %v6078_v9  ;;  %5530 = vmatprep.mubr.bf16.mxu0 %v6086_v11  ;;  %v4886_v9 = vld [vmem:[%s6423_s15 + $0x40] sm:$0xf]  ;;  %v4883_v11 = vld [vmem:[%s6423_s15 + $0x34] sm:$0x1]  ;;  %v1918_v37 = vrot.slane %v1917_v23, 4 }
 0x11f   : > { %5520 = vmatprep.subr.bf16.mxu0 %v6079_v12  ;;  %v1939_v18 = vshrl.u32 %v4886_v9, 16  ;;  %v1942_v19 = vshll.u32 %v4886_v9, 16  ;;  %v1920_v24 = vshll.u32 %v4883_v11, 16  ;;  %2156 = vst [vmem:[#allocation2 + $0x38] sm:$0xf] %v6293_v59 }
 0x120   : > { %2157 = vst [vmem:[#allocation2 + $0x3c] sm:$0x1] %v6293_v59  ;;  %2158 = vst [vmem:[#allocation2 + $0x40] sm:$0xf] %v6293_v59 }
 0x121   : > { %v1941_v33 = vrot.slane %v1939_v18, 4  ;;  %v1922_v38 = vrot.slane %v1920_v24, 5  ;;  %2159 = vst [vmem:[#allocation2 + $0x44] sm:$0x1] %v6293_v59  ;;  %2160 = vst [vmem:[#allocation2 + $0x48] sm:$0xf] %v6293_v59 }
 0x122   : > { %5521 = vmatpush3.bf16.msra.mxu0 %v6079_v12  ;;  %v1875_v12 = vor.u32 %v1874_v63, %v1871_v62  ;;  %2161 = vst [vmem:[#allocation2 + $0x4c] sm:$0x1] %v6293_v59  ;;  %v6101_v62 = vld [vmem:[#allocation3 + $0x58] sm:$0xff]   ;;  %v6102_v63 = vld [vmem:[#allocation3 + $0x60] sm:$0xff]  }
 0x123   : > { %5522 = vmatprep.subr.bf16.mxu0 %v6080_v13  ;;  %v1923_v48 = vsel %vm6485_vm2, %v1918_v37, %v1922_v38  ;;  %v2281_v38 = vld [vmem:[#allocation2 + $0x18] sm:$0xf] }
 0x124   : > { %v1876_v26 = vrot.slane %v1875_v12, 4 }
 0x126   : > { %5523 = vmatpush3.bf16.msra.mxu0 %v6080_v13  ;;  %v1878_v13 = vshll.u32 %v4877_v2, 16  ;;  %v6105_v2 = vld [vmem:[#allocation3 + $0x78] sm:$0xff]  }
 0x127   : > { %5524 = vmatprep.subr.bf16.mxu0 %v6081_v14 }
 0x128   : > { %v1880_v27 = vrot.slane %v1878_v13, 5 }
 0x12a   : > { %5525 = vmatpush3.bf16.msra.mxu0 %v6081_v14  ;;  %v1889_v14 = vor.u32 %v1888_v1, %v1885_v0  ;;  %v1881_v40 = vsel %vm6485_vm2, %v1876_v26, %v1880_v27  ;;  %v6103_v0 = vld [vmem:[#allocation3 + $0x68] sm:$0xff]   ;;  %v6104_v1 = vld [vmem:[#allocation3 + $0x70] sm:$0xff]  }
 0x12b   : > { %5526 = vmatprep.subr.bf16.mxu0 %v6083_v17  ;;  %v6790_v27 = vld [vmem:[#allocation2 + $0x4] sm:$0x1] }
 0x12c   : > { %v1890_v28 = vrot.slane %v1889_v14, 4 }
 0x12e   : > { %5527 = vmatpush3.bf16.msra.mxu0 %v6083_v17  ;;  %v1928_v17 = vshll.u32 %v4884_v4, 16  ;;  %v6764_v4 = vld [vmem:[#allocation2] sm:$0xf] }
 0x12f   : > { %5528 = vmatprep.subr.bf16.mxu0 %v6085_v22  ;;  %v2350_v8 = vshrl.u32 %v6764_v4, 16  ;;  %v2353_v9 = vshll.u32 %v6764_v4, 16 }
 0x130   : > { %v1930_v32 = vrot.slane %v1928_v17, 5 }
 0x132   : > { %5529 = vmatpush3.bf16.msra.mxu0 %v6085_v22  ;;  %v1906_v22 = vshll.u32 %v4881_v10, 16  ;;  %v1931_v43 = vor.u32 %v1930_v32, %v1927_v31  ;;  %v2359_v32 = vshll.u32 %v6790_v27, 16 }
 0x133   : > { %5538 = vmatprep.subr.bf16.mxu0 %v6087_v29 }
 0x134   : > { %v1932_v52 = vrot.slane %v1931_v43, 4 }
 0x135   : > { %5531 = vmatmul.mubr.bf16.vlgmr.msra.gmra.mrb[0].mxu0 %v6088_v34  ;;  %v1944_v34 = vrot.slane %v1942_v19, 5  ;;  %v6784_v19 = vrot.slane %v2350_v8, 4 }
 0x136   : > { %5539 = vmatpush3.bf16.msra.mxu0 %v6087_v29  ;;  %5534 = vmatprep.mubr.bf16.mxu0 %v6094_v35  ;;  %v1894_v29 = vrot.slane %v1892_v15, 5  ;;  %v1904_v35 = vrot.slane %v1903_v21, 4 }
 0x137   : > { %5540 = vmatprep.subr.bf16.mxu0 %v6089_v36 }
 0x138   : > { %v1895_v42 = vsel %vm6485_vm2, %v1890_v28, %v1894_v29 }
 0x13a   : > { %5541 = vmatpush3.bf16.msra.mxu0 %v6089_v36  ;;  %v1908_v36 = vrot.slane %v1906_v22, 5 }
 0x13b   : > { %5542 = vmatprep.subr.bf16.mxu0 %v6090_v41 }
 0x13c   : > { %v1909_v46 = vsel %vm6485_vm2, %v1904_v35, %v1908_v36 }
 0x13d   : > { %5535 = vmatmul.mubr.bf16.gmra.mrb[4].mxu0 %v6095_v44  ;;  %v1945_v44 = vor.u32 %v1944_v34, %v1941_v33  ;;  %v4906_v51 = vcombine.low %v1909_v46, %v1923_v48  ;;  %v2266_v48 = vld [vmem:[#allocation2 + $0x8] sm:$0xf] }
 0x13e   : > { %5543 = vmatpush3.bf16.msra.mxu0 %v6090_v41  ;;  %5554 = vmatprep.mubr.bf16.mxu0 %v4904_v45  ;;  %v1934_v41 = vshll.u32 %v4885_v30, 16  ;;  %v1948_v45 = vshll.u32 %v4887_v39, 16  ;;  %v2284_v39 = vld [vmem:[#allocation2 + $0x1c] sm:$0x1] }
 0x13f   : > { %5544 = vmatprep.subr.bf16.mxu0 %v6091_v49  ;;  %v1946_v53 = vrot.slane %v1945_v44, 4 }
 0x140   : > { %v1936_v50 = vrot.slane %v1934_v41, 5  ;;  %v1950_v54 = vrot.slane %v1948_v45, 5 }
 0x142   : > { %5545 = vmatpush3.bf16.msra.mxu0 %v6091_v49  ;;  %v4905_v49 = vcombine.low %v1881_v40, %v1895_v42  ;;  %v1937_v55 = vsel %vm6485_vm2, %v1932_v52, %v1936_v50 }
 0x143   : > { %5546 = vmatprep.subr.bf16.mxu0 %v6092_v56 }
 0x146   : > { %5547 = vmatpush3.bf16.msra.mxu0 %v6092_v56  ;;  %v1951_v56 = vsel %vm6485_vm2, %v1946_v53, %v1950_v54 }
 0x147   : > { %5548 = vmatprep.subr.bf16.mxu0 %v6093_v61  ;;  %v4907_v57 = vcombine.low %v1937_v55, %v1951_v56  ;;  %v2272_v55 = vld [vmem:[#allocation2 + $0xc] sm:$0x1] }
 0x14a   : > { %5549 = vmatpush3.bf16.msra.mxu0 %v6093_v61  ;;  %v6100_v61 = vld [vmem:[#allocation3 + $0x50] sm:$0xff]  }
 0x14b   : > { %5550 = vmatprep.subr.bf16.mxu0 %v6096_v20  ;;  %5566 = vmatprep.subr.bf16.mxu1 %v6100_v61 }
 0x14c   : > { %5567 = vmatpush3.bf16.msra.mxu1 %v6100_v61 }
 0x14d   : > { %5568 = vmatprep.subr.bf16.mxu1 %v6101_v62 }
 0x14e   : > { %5551 = vmatpush3.bf16.msra.mxu0 %v6096_v20  ;;  %v6786_v20 = vrot.slane %v2353_v9, 5 }
 0x14f   : > { %5552 = vmatprep.subr.bf16.mxu0 %v6097_v25 }
 0x150   : > { %5569 = vmatpush3.bf16.msra.mxu1 %v6101_v62  ;;  %v2356_v31 = vor.u32 %v6786_v20, %v6784_v19  ;;  %v2287_v62 = vld [vmem:[#allocation2 + $0x20] sm:$0xf] }
 0x151   : > { %5570 = vmatprep.subr.bf16.mxu1 %v6102_v63 }
 0x152   : > { %5553 = vmatpush3.bf16.msra.mxu0 %v6097_v25 }
 0x154   : > { %5571 = vmatpush3.bf16.msra.mxu1 %v6102_v63 }
 0x155   : > { %5555 = vmatmul.mubr.bf16.vlgmr.msra.gmra.mrb[0].mxu0 %v4905_v49  ;;  %5572 = vmatprep.subr.bf16.mxu1 %v6103_v0 }
 0x156   : > { %5558 = vmatprep.mubr.bf16.mxu0 %v4906_v51 }
 0x158   : > { %5573 = vmatpush3.bf16.msra.mxu1 %v6103_v0 }
 0x159   : > { %5574 = vmatprep.subr.bf16.mxu1 %v6104_v1 }
 0x15c   : > { %5575 = vmatpush3.bf16.msra.mxu1 %v6104_v1 }
 0x15d   : > { %5559 = vmatmul.mubr.bf16.gmra.mrb[4].mxu0 %v4907_v57  ;;  %5576 = vmatprep.subr.bf16.mxu1 %v6105_v2 }
 0x160   : > { %5577 = vmatpush3.bf16.msra.mxu1 %v6105_v2  ;;  %v2290_v2 = vld [vmem:[#allocation2 + $0x24] sm:$0x1] }
 0x161   : > { %5586 = vmatprep.subr.bf16.mxu1 %v6761_v3 }
 0x228   : > { %v5556_v7 = vpop.f32.mrb[0].mxu0 }
 0x229   : > { %v2112_v10 = vmul.f32 %v5556_v7, %v6769_v5  ;;  %v2067_v11 = vpop.f32.mrb[1].mxu0 }
 0x22a   : > { %v2110_v12 = vmul.f32 %v6769_v5, %v2067_v11  ;;  %v5557_v13 = vpop.f32.mrb[2].mxu0 }
 0x22b   : > { %v2124_v14 = vadd.f32 %v6774_v6, %v2112_v10  ;;  %v2113_v15 = vmul.f32 %v5557_v13, %v6769_v5  ;;  %v2070_v16 = vpop.f32.mrb[3].mxu0  ;;  %v2275_v13 = vld [vmem:[#allocation2 + $0x10] sm:$0xf] }
 0x22c   : > { %v2122_v17 = vadd.f32 %v6774_v6, %v2110_v12  ;;  %v2111_v18 = vmul.f32 %v6769_v5, %v2070_v16 }
 0x22d   : > { %v2132_v21 = vmax.f32 %v2124_v14, 0.0  ;;  %v2125_v22 = vadd.f32 %v6774_v6, %v2113_v15  ;;  %v2278_v14 = vld [vmem:[#allocation2 + $0x14] sm:$0x1] }
 0x22e   : > { %v2130_v23 = vmax.f32 %v2122_v17, 0.0  ;;  %v2123_v24 = vadd.f32 %v6774_v6, %v2111_v18 }
 0x22f   : > { %v5088_v25 = vpack.c.bf16 %v2132_v21, %v2132_v21  ;;  %v2133_v26 = vmax.f32 %v2125_v22, 0.0 }
 0x230   : > { %v5086_v28 = vpack.c.bf16 %v2130_v23, %v2130_v23  ;;  %v2131_v29 = vmax.f32 %v2123_v24, 0.0  ;;  %v5560_v30 = vpop.f32.mrb[4].mxu0 }
 0x231   : > { %v2199_v33 = vshrl.u32 %v5088_v25, 16  ;;  %v2202_v34 = vshll.u32 %v5088_v25, 16  ;;  %v5089_v35 = vpack.c.bf16 %v2133_v26, %v2133_v26  ;;  %v2116_v36 = vmul.f32 %v5560_v30, %v6769_v5  ;;  %v2083_v37 = vpop.f32.mrb[5].mxu0 }
 0x232   : > { %v2183_v40 = vshrl.u32 %v5086_v28, 16  ;;  %v2186_v41 = vshll.u32 %v5086_v28, 16  ;;  %v5087_v42 = vpack.c.bf16 %v2131_v29, %v2131_v29  ;;  %v2114_v43 = vmul.f32 %v6769_v5, %v2083_v37  ;;  %v5561_v44 = vpop.f32.mrb[6].mxu0 }
 0x233   : > { %v2201_v45 = vrot.slane %v2199_v33, 7  ;;  %v2207_v49 = vshrl.u32 %v5089_v35, 16  ;;  %v2210_v50 = vshll.u32 %v5089_v35, 16  ;;  %v2128_v51 = vadd.f32 %v6774_v6, %v2116_v36  ;;  %v2086_v52 = vpop.f32.mrb[7].mxu0 }
 0x234   : > { %v2185_v54 = vrot.slane %v2183_v40, 7  ;;  %v2191_v56 = vshrl.u32 %v5087_v42, 16  ;;  %v2194_v57 = vshll.u32 %v5087_v42, 16  ;;  %v2126_v58 = vadd.f32 %v6774_v6, %v2114_v43  ;;  %v2308_v40 = vld [vmem:[#allocation2 + $0x3c] sm:$0x1] }
 0x235   : > { %v2204_v59 = vor.u32 %v2202_v34, %v2201_v45  ;;  %v2205_v60 = vrot.slane %v2201_v45, 4  ;;  %v2209_v61 = vrot.slane %v2207_v49, 7  ;;  %v2136_v63 = vmax.f32 %v2128_v51, 0.0  ;;  %v2305_v34 = vld [vmem:[#allocation2 + $0x38] sm:$0xf] }
 0x236   : > { %v2188_v0 = vor.u32 %v2186_v41, %v2185_v54  ;;  %v2189_v1 = vrot.slane %v2185_v54, 4  ;;  %v2193_v7 = vrot.slane %v2191_v56, 7  ;;  %v2134_v8 = vmax.f32 %v2126_v58, 0.0  ;;  %v2293_v43 = vld [vmem:[#allocation2 + $0x28] sm:$0xf] }
 0x237   : > { %v2282_v9 = vsel %vm6799_vm7, %v2204_v59, %v2281_v38  ;;  %v2285_v10 = vsel %vm6806_vm8, %v2205_v60, %v2284_v39  ;;  %v2212_v11 = vor.u32 %v2210_v50, %v2209_v61  ;;  %v2213_v12 = vrot.slane %v2209_v61, 4 }
 0x238   : > { %2283 = vst [vmem:[#allocation2 + $0x18] sm:$0xf] %v2282_v9  ;;  %2286 = vst [vmem:[#allocation2 + $0x1c] sm:$0x1] %v2285_v10  ;;  %v2267_v15 = vsel %vm6799_vm7, %v2188_v0, %v2266_v48  ;;  %v2273_v16 = vsel %vm6806_vm8, %v2189_v1, %v2272_v55  ;;  %v2196_v17 = vor.u32 %v2194_v57, %v2193_v7  ;;  %v2197_v18 = vrot.slane %v2193_v7, 4 }
 0x239   : > { %2268 = vst [vmem:[#allocation2 + $0x8] sm:$0xf] %v2267_v15  ;;  %2274 = vst [vmem:[#allocation2 + $0xc] sm:$0x1] %v2273_v16  ;;  %v2288_v21 = vsel %vm6799_vm7, %v2212_v11, %v2287_v62  ;;  %v2291_v22 = vsel %vm6806_vm8, %v2213_v12, %v2290_v2  ;;  %v5092_v23 = vpack.c.bf16 %v2136_v63, %v2136_v63  ;;  %v6834_v37 = vrot.slane %v2356_v31, 4 }
 0x23a   : > { %v5090_v24 = vpack.c.bf16 %v2134_v8, %v2134_v8  ;;  %2289 = vst [vmem:[#allocation2 + $0x20] sm:$0xf] %v2288_v21  ;;  %2292 = vst [vmem:[#allocation2 + $0x24] sm:$0x1] %v2291_v22  ;;  %v2276_v25 = vsel %vm6799_vm7, %v2196_v17, %v2275_v13  ;;  %v2279_v26 = vsel %vm6806_vm8, %v2197_v18, %v2278_v14  ;;  %v6838_v38 = vrot.slane %v2359_v32, 5 }
 0x23b   : > { %v2117_v28 = vmul.f32 %v5561_v44, %v6769_v5  ;;  %v2115_v29 = vmul.f32 %v6769_v5, %v2086_v52  ;;  %2277 = vst [vmem:[#allocation2 + $0x10] sm:$0xf] %v2276_v25  ;;  %2280 = vst [vmem:[#allocation2 + $0x14] sm:$0x1] %v2279_v26  ;;  %v2231_v30 = vshrl.u32 %v5092_v23, 16  ;;  %v2234_v5 = vshll.u32 %v5092_v23, 16 }
 0x23c   : > { %v2215_v33 = vshrl.u32 %v5090_v24, 16  ;;  %v2218_v42 = vshll.u32 %v5090_v24, 16  ;;  %v2296_v44 = vld [vmem:[#allocation2 + $0x2c] sm:$0x1]  ;;  %v2362_v54 = vsel %vm6485_vm2, %v6834_v37, %v6838_v38  ;;  %v2311_v0 = vld [vmem:[#allocation2 + $0x40] sm:$0xf] }
 0x23d   : > { %v2129_v35 = vadd.f32 %v6774_v6, %v2117_v28  ;;  %v2127_v36 = vadd.f32 %v6774_v6, %v2115_v29  ;;  %v2233_v39 = vrot.slane %v2231_v30, 7  ;;  %v2314_v1 = vld [vmem:[#allocation2 + $0x44] sm:$0x1]  ;;  %v2299_v7 = vld [vmem:[#allocation2 + $0x30] sm:$0xf] }
 0x23e   : > { %v2217_v41 = vrot.slane %v2215_v33, 7  ;;  %v2302_v14 = vld [vmem:[#allocation2 + $0x34] sm:$0x1] }
 0x23f   : > { %v2137_v45 = vmax.f32 %v2129_v35, 0.0  ;;  %v2135_v48 = vmax.f32 %v2127_v36, 0.0  ;;  %v2236_v49 = vor.u32 %v2234_v5, %v2233_v39  ;;  %v2237_v6 = vrot.slane %v2233_v39, 4  ;;  %v6840_v19 = vld [vmem:[#allocation2 + $0x18] sm:$0xf] }
 0x240   : > { %v2220_v50 = vor.u32 %v2218_v42, %v2217_v41  ;;  %v2221_v51 = vrot.slane %v2217_v41, 4  ;;  %v6842_v52 = vld [vmem:[#allocation2 + $0x8] sm:$0xf]  ;;  %v6844_v32 = vld [vmem:[#allocation2 + $0xc] sm:$0x1]  ;;  %v2392_v63 = vshrl.u32 %v6840_v19, 16 }
 0x241   : > { %v5093_v20 = vpack.c.bf16 %v2137_v45, %v2137_v45  ;;  %v5091_v31 = vpack.c.bf16 %v2135_v48, %v2135_v48  ;;  %v2306_v55 = vsel %vm6799_vm7, %v2236_v49, %v2305_v34  ;;  %v2309_v56 = vsel %vm6806_vm8, %v2237_v6, %v2308_v40  ;;  %v6868_v21 = vld [vmem:[#allocation2 + $0x1c] sm:$0x1]  ;;  %v6872_v29 = vld [vmem:[#allocation2 + $0x20] sm:$0xf] }
 0x242   : > { %v2294_v57 = vsel %vm6799_vm7, %v2220_v50, %v2293_v43  ;;  %v2297_v58 = vsel %vm6806_vm8, %v2221_v51, %v2296_v44  ;;  %2307 = vst [vmem:[#allocation2 + $0x38] sm:$0xf] %v2306_v55  ;;  %2310 = vst [vmem:[#allocation2 + $0x3c] sm:$0x1] %v2309_v56  ;;  %v6858_v62 = vld [vmem:[#allocation2 + $0x10] sm:$0xf] }
 0x243   : > { %2295 = vst [vmem:[#allocation2 + $0x28] sm:$0xf] %v2294_v57  ;;  %2298 = vst [vmem:[#allocation2 + $0x2c] sm:$0x1] %v2297_v58  ;;  %v2239_v59 = vshrl.u32 %v5093_v20, 16  ;;  %v2242_v60 = vshll.u32 %v5093_v20, 16 }
 0x244   : > { %v2223_v61 = vshrl.u32 %v5091_v31, 16  ;;  %v2226_v2 = vshll.u32 %v5091_v31, 16  ;;  %v2364_v8 = vshrl.u32 %v6842_v52, 16  ;;  %v2367_v9 = vshll.u32 %v6842_v52, 16  ;;  %v6864_v11 = vld [vmem:[#allocation2 + $0x14] sm:$0x1] }
 0x245   : > { %v2373_v10 = vshll.u32 %v6844_v32, 16  ;;  %v2241_v12 = vrot.slane %v2239_v59, 7  ;;  %v2378_v15 = vshrl.u32 %v6858_v62, 16  ;;  %v2381_v16 = vshll.u32 %v6858_v62, 16  ;;  %v6888_v51 = vld [vmem:[#allocation2 + $0x24] sm:$0x1] }
 0x246   : > { %v2225_v13 = vrot.slane %v2223_v61, 7  ;;  %v2366_v17 = vrot.slane %v2364_v8, 4  ;;  %v2369_v18 = vrot.slane %v2367_v9, 5  ;;  %v2387_v22 = vshll.u32 %v6864_v11, 16 }
 0x247   : > { %v2395_v23 = vshll.u32 %v6840_v19, 16  ;;  %v2244_v24 = vor.u32 %v2242_v60, %v2241_v12  ;;  %v2245_v25 = vrot.slane %v2241_v12, 4  ;;  %v2375_v33 = vrot.slane %v2373_v10, 5 }
 0x248   : > { %v2228_v26 = vor.u32 %v2226_v2, %v2225_v13  ;;  %v2229_v28 = vrot.slane %v2225_v13, 4  ;;  %v2370_v30 = vor.u32 %v2369_v18, %v2366_v17  ;;  %v2380_v34 = vrot.slane %v2378_v15, 4 }
 0x249   : > { %v2383_v35 = vrot.slane %v2381_v16, 5  ;;  %v2312_v36 = vsel %vm6799_vm7, %v2244_v24, %v2311_v0  ;;  %v2315_v39 = vsel %vm6806_vm8, %v2245_v25, %v2314_v1  ;;  %v2394_v43 = vrot.slane %v2392_v63, 4  ;;  %v6891_v31 = vld [vmem:[#allocation2 + $0x38] sm:$0xf]  ;;  %v6905_v37 = vld [vmem:[#allocation2 + $0x3c] sm:$0x1] }
 0x24a   : > { %v2300_v5 = vsel %vm6799_vm7, %v2228_v26, %v2299_v7  ;;  %v2303_v40 = vsel %vm6806_vm8, %v2229_v28, %v2302_v14  ;;  %2313 = vst [vmem:[#allocation2 + $0x40] sm:$0xf] %v2312_v36  ;;  %2316 = vst [vmem:[#allocation2 + $0x44] sm:$0x1] %v2315_v39  ;;  %v2371_v41 = vrot.slane %v2370_v30, 4  ;;  %v2397_v44 = vrot.slane %v2395_v23, 5 }
 0x24b   : > { %2301 = vst [vmem:[#allocation2 + $0x30] sm:$0xf] %v2300_v5  ;;  %2304 = vst [vmem:[#allocation2 + $0x34] sm:$0x1] %v2303_v40  ;;  %v2384_v42 = vor.u32 %v2383_v35, %v2380_v34  ;;  %v2389_v45 = vrot.slane %v2387_v22, 5  ;;  %v2401_v48 = vshll.u32 %v6868_v21, 16 }
 0x24c   : > { %v6883_v49 = vld [vmem:[#allocation2 + $0x28] sm:$0xf]  ;;  %v2406_v6 = vshrl.u32 %v6872_v29, 16  ;;  %v2376_v46 = vsel %vm6485_vm2, %v2371_v41, %v2375_v33  ;;  %v2398_v50 = vor.u32 %v2397_v44, %v2394_v43  ;;  %v2409_v20 = vshll.u32 %v6872_v29, 16  ;;  %v6900_v60 = vld [vmem:[#allocation2 + $0x2c] sm:$0x1] }
 0x24d   : > { %v2385_v53 = vrot.slane %v2384_v42, 4  ;;  %v4926_v55 = vcombine.low %v2362_v54, %v2376_v46  ;;  %v2403_v56 = vrot.slane %v2401_v48, 5  ;;  %v2420_v63 = vshrl.u32 %v6883_v49, 16  ;;  %v6107_v0 = vld [vmem:[#allocation3 + $0x8] sm:$0xff]   ;;  %v2746_v23 = vld [vmem:[#allocation2 + $0x10] sm:$0xe] }
 0x24e   : > { %v2408_v57 = vrot.slane %v2406_v6, 4  ;;  %v2399_v59 = vrot.slane %v2398_v50, 4  ;;  %v2411_v61 = vrot.slane %v2409_v20, 5  ;;  %v2415_v1 = vshll.u32 %v6888_v51, 16  ;;  %v2747_v36 = vld [vmem:[#allocation2 + $0x18] sm:$0xe] }
 0x24f   : > { %v2390_v58 = vsel %vm6485_vm2, %v2385_v53, %v2389_v45  ;;  %5578 = vmatprep.mubr.bf16.mxu1 %v4926_v55  ;;  %v2423_v2 = vshll.u32 %v6883_v49, 16  ;;  %v2448_v38 = vshrl.u32 %v6891_v31, 16  ;;  %v2422_v8 = vrot.slane %v2420_v63, 4  ;;  %v6108_v40 = vld [vmem:[#allocation3 + $0x10] sm:$0xff]   ;;  %v6110_v55 = vld [vmem:[#allocation3 + $0x18] sm:$0xff]  }
 0x250   : > { %v2404_v54 = vsel %vm6485_vm2, %v2399_v59, %v2403_v56  ;;  %v2412_v7 = vor.u32 %v2411_v61, %v2408_v57  ;;  %v2451_v9 = vshll.u32 %v6891_v31, 16  ;;  %v2429_v13 = vshll.u32 %v6900_v60, 16 }
 0x251   : > { %v4927_v10 = vcombine.low %v2390_v58, %v2404_v54  ;;  %v2425_v12 = vrot.slane %v2423_v2, 5  ;;  %v2781_v16 = vrot.slane %v6864_v11, 5  ;;  %v2417_v24 = vrot.slane %v2415_v1, 5  ;;  %v2751_v58 = vld [vmem:[#allocation2 + $0x38] sm:$0xe] }
 0x252   : > { %v6912_v14 = vld [vmem:[#allocation2 + $0x30] sm:$0xf]  ;;  %v2347_v15 = vld [vmem:[#allocation2 + $0x34] sm:$0x1]  ;;  %v2413_v17 = vrot.slane %v2412_v7, 4  ;;  %v2450_v26 = vrot.slane %v2448_v38, 4  ;;  %v4938_v38 = vcombine.low %v6764_v4, %v6842_v52 }
 0x253   : > { %v2434_v18 = vshrl.u32 %v6912_v14, 16  ;;  %v2437_v22 = vshll.u32 %v6912_v14, 16  ;;  %5579 = vmatmul.mubr.bf16.vlgmr.msra.gmra.mrb[0].mxu1 %v4927_v10  ;;  %v2426_v25 = vor.u32 %v2425_v12, %v2422_v8  ;;  %v2453_v28 = vrot.slane %v2451_v9, 5  ;;  %v2750_v20 = vld [vmem:[#allocation2 + $0x30] sm:$0xe]  ;;  %v6112_v4 = vld [vmem:[#allocation3 + $0x28] sm:$0xff]  }
 0x254   : > { %5587 = vmatpush3.bf16.msra.mxu1 %v6761_v3  ;;  %v2443_v34 = vshll.u32 %v2347_v15, 16  ;;  %v2457_v35 = vshll.u32 %v6905_v37, 16  ;;  %v2785_v11 = vrot.slane %v6868_v21, 5  ;;  %v2431_v5 = vrot.slane %v2429_v13, 5  ;;  %v6111_v8 = vld [vmem:[#allocation3 + $0x20] sm:$0xff]   ;;  %v6113_v52 = vld [vmem:[#allocation3 + $0x30] sm:$0xff]  }
 0x255   : > { %v2436_v30 = vrot.slane %v2434_v18, 4  ;;  %v2439_v33 = vrot.slane %v2437_v22, 5  ;;  %5588 = vmatprep.subr.bf16.mxu1 %v6107_v0  ;;  %v2427_v39 = vrot.slane %v2426_v25, 4  ;;  %v2454_v41 = vor.u32 %v2453_v28, %v2450_v26  ;;  %v6116_v13 = vld [vmem:[#allocation3 + $0x80] sm:$0xff]   ;;  %v6118_v18 = vld [vmem:[#allocation3 + $0x88] sm:$0xff]   ;;  %v6120_v28 = vld [vmem:[#allocation3 + $0x90] sm:$0xff]  }
 0x256   : > { %v2418_v42 = vsel %vm6485_vm2, %v2413_v17, %v2417_v24  ;;  %v4952_v21 = vrot.slane %v2746_v23, 9  ;;  %v4953_v48 = vrot.slane %v2747_v36, 9  ;;  %v2445_v53 = vrot.slane %v2443_v34, 5  ;;  %v2749_v34 = vld [vmem:[#allocation2 + $0x28] sm:$0xe] }
 0x257   : > { %v2440_v43 = vor.u32 %v2439_v33, %v2436_v30  ;;  %v2432_v44 = vsel %vm6485_vm2, %v2427_v39, %v2431_v5  ;;  %v2455_v45 = vrot.slane %v2454_v41, 4  ;;  %v2459_v50 = vrot.slane %v2457_v35, 5  ;;  %v6124_v33 = vld [vmem:[#allocation3 + $0xb0] sm:$0xff]   ;;  %v6125_v35 = vld [vmem:[#allocation3 + $0xb8] sm:$0xff]  }
 0x258   : > { %5589 = vmatpush3.bf16.msra.mxu1 %v6107_v0  ;;  %v4928_v6 = vcombine.low %v2418_v42, %v2432_v44  ;;  %v6932_v56 = vsel %vm6924_vm11, %v4952_v21, %v2781_v16  ;;  %v6936_v57 = vsel %vm6924_vm11, %v4953_v48, %v2785_v11  ;;  %v4956_v1 = vrot.slane %v2750_v20, 9  ;;  %v2745_v16 = vld [vmem:[#allocation2 + $0x8] sm:$0xe]  ;;  %v2748_v36 = vld [vmem:[#allocation2 + $0x20] sm:$0xe]  ;;  %v6126_v11 = vld [vmem:[#allocation3 + $0xc0] sm:$0xff]  }
 0x259   : > { %v2441_v46 = vrot.slane %v2440_v43, 4  ;;  %5590 = vmatprep.subr.bf16.mxu1 %v6108_v40  ;;  %v2460_v61 = vsel %vm6485_vm2, %v2455_v45, %v2459_v50  ;;  %v4959_v63 = vcombine.low %v6932_v56, %v6936_v57  ;;  %v2797_v2 = vrot.slane %v2347_v15, 5  ;;  %v2744_v15 = vld [vmem:[#allocation2] sm:$0xe]  ;;  %v6127_v42 = vld [vmem:[#allocation3 + $0xc8] sm:$0xff]   ;;  %v6131_v45 = vld [vmem:[#allocation3 + $0xe0] sm:$0xff]  }
 0x25a   : > { %5582 = vmatprep.mubr.bf16.mxu1 %v4928_v6  ;;  %v4957_v54 = vrot.slane %v2751_v58, 9  ;;  %v2801_v7 = vrot.slane %v6905_v37, 5  ;;  %v6114_v37 = vld [vmem:[#allocation3 + $0x38] sm:$0xff]   ;;  %v4939_v17 = vcombine.low %v6858_v62, %v6840_v19  ;;  %v4940_v22 = vcombine.low %v6872_v29, %v6883_v49  ;;  %v6122_v29 = vld [vmem:[#allocation3 + $0xa0] sm:$0xff]   ;;  %v6123_v49 = vld [vmem:[#allocation3 + $0xa8] sm:$0xff]  }
 0x25b   : > { %v2446_v59 = vsel %vm6485_vm2, %v2441_v46, %v2445_v53  ;;  %v6949_v9 = vsel %vm6924_vm11, %v4956_v1, %v2797_v2  ;;  %v2773_v23 = vrot.slane %v6790_v27, 5  ;;  %v2777_v24 = vrot.slane %v6844_v32, 5  ;;  %v6121_v27 = vld [vmem:[#allocation3 + $0x98] sm:$0xff]   ;;  %v6132_v21 = vld [vmem:[#allocation3 + $0xe8] sm:$0xff]   ;;  %v3129_v48 = vld [vmem:[#allocation2 + $0x10] sm:$0xf] }
 0x25c   : > { %v4929_v0 = vcombine.low %v2446_v59, %v2460_v61  ;;  %5591 = vmatpush3.bf16.msra.mxu1 %v6108_v40  ;;  %v6953_v10 = vsel %vm6924_vm11, %v4957_v54, %v2801_v7  ;;  %v4950_v25 = vrot.slane %v2744_v15, 9  ;;  %v4951_v26 = vrot.slane %v2745_v16, 9  ;;  %v6129_v44 = vld [vmem:[#allocation2 + $0x8] ss:$8 sps:$4 sm:$0xff]   ;;  %v6133_v6 = vld [vmem:[#allocation3 + $0xf0] sm:$0xff]   ;;  %v6138_v54 = vld [vmem:[#allocation3 + $0x108] sm:$0xff]  }
 0x25d   : > { %5592 = vmatprep.subr.bf16.mxu1 %v6110_v55  ;;  %v4961_v12 = vcombine.low %v6949_v9, %v6953_v10  ;;  %v4941_v62 = vcombine.low %v6912_v14, %v6891_v31  ;;  %v4955_v31 = vrot.slane %v2749_v34, 9  ;;  %v2793_v14 = vrot.slane %v6900_v60, 5  ;;  %v6128_v60 = vld [vmem:[#allocation3 + $0xd0] sm:$0xff]   ;;  %v3127_v46 = vld [vmem:[#allocation2 + $0x8] sm:$0xf]  ;;  %v6136_v59 = vld [vmem:[#allocation3 + $0x100] sm:$0xff]  }
 0x25e   : > { %5583 = vmatmul.mubr.bf16.gmra.mrb[4].mxu1 %v4929_v0  ;;  %v2774_v30 = vsel %vm6924_vm11, %v4950_v25, %v2773_v23  ;;  %v2778_v19 = vsel %vm6924_vm11, %v4951_v26, %v2777_v24  ;;  %v4954_v39 = vrot.slane %v2748_v36, 9  ;;  %v2789_v5 = vrot.slane %v6888_v51, 5  ;;  %v6130_v51 = vld [vmem:[#allocation3 + $0xd8] sm:$0xff]   ;;  %v6981_v0 = vld [vmem:[#allocation2 + $0x14] sm:$0x1]  ;;  %v6143_v36 = vld [vmem:[#allocation3 + $0x128] sm:$0xff]  }
 0x25f   : > { %5602 = vmatprep.mubr.bf16.mxu1 %v4938_v38  ;;  %v4958_v32 = vcombine.low %v2774_v30, %v2778_v19  ;;  %v2794_v40 = vsel %vm6924_vm11, %v4955_v31, %v2793_v14  ;;  %v3158_v53 = vshrl.u32 %v3129_v48, 16  ;;  %v3161_v50 = vshll.u32 %v3129_v48, 16  ;;  %v6134_v20 = vld [vmem:[#allocation3 + $0xf8] sm:$0xff]   ;;  %v6135_v38 = vld [vmem:[#allocation2 + $0x18] ss:$8 sps:$4 sm:$0xff]   ;;  %v7008_v26 = vld [vmem:[%s7258_s3 + $0x10] sm:$0xff]  }
 0x260   : > { %5593 = vmatpush3.bf16.msra.mxu1 %v6110_v55  ;;  %v2790_v41 = vsel %vm6924_vm11, %v4954_v39, %v2789_v5  ;;  %v3144_v55 = vshrl.u32 %v3127_v46, 16  ;;  %v3147_v56 = vshll.u32 %v3127_v46, 16  ;;  %v6983_v2 = vld [vmem:[#allocation2 + $0xc] sm:$0x1]  ;;  %v6137_v9 = vld [vmem:[#allocation2 + $0x28] ss:$8 sps:$4 sm:$0xff]  }
 0x261   : > { %5594 = vmatprep.subr.bf16.mxu1 %v6111_v8  ;;  %v4960_v43 = vcombine.low %v2790_v41, %v2794_v40  ;;  %v3160_v57 = vrot.slane %v3158_v53, 4  ;;  %v3163_v58 = vrot.slane %v3161_v50, 5  ;;  %v3153_v10 = vshll.u32 %v6983_v2, 16  ;;  %v6996_v15 = vld [vmem:[%s7258_s3 + $0x8] sm:$0xff]   ;;  %v3133_v25 = vld [vmem:[#allocation2 + $0x20] sm:$0xf] }
 0x262   : > { %v3146_v61 = vrot.slane %v3144_v55, 4  ;;  %v6141_v23 = vld [vmem:[#allocation3 + $0x118] sm:$0xff]   ;;  %v6142_v30 = vld [vmem:[#allocation3 + $0x120] sm:$0xff]   ;;  %v3131_v19 = vld [vmem:[#allocation2 + $0x18] sm:$0xf] }
 0x263   : > { %v3164_v1 = vor.u32 %v3163_v58, %v3160_v57  ;;  %v3155_v16 = vrot.slane %v3153_v10, 5  ;;  %v3172_v34 = vshrl.u32 %v3131_v19, 16  ;;  %v3139_v48 = vld [vmem:[#allocation2 + $0x38] sm:$0xf]  ;;  %v7032_v53 = vld [vmem:[#allocation2 + $0x34] sm:$0x1] }
 0x264   : > { %5595 = vmatpush3.bf16.msra.mxu1 %v6111_v8  ;;  %v3167_v8 = vshll.u32 %v6981_v0, 16  ;;  %v7035_v55 = vld [vmem:[#allocation2 + $0x1c] sm:$0x1]  ;;  %v6193_v3 = vld [vmem:[%s6423_s15 + $0x108] ss:$8 sps:$4 sm:$0xff]  }
 0x265   : > { %5596 = vmatprep.subr.bf16.mxu1 %v6112_v4 }
 0x268   : > { %5597 = vmatpush3.bf16.msra.mxu1 %v6112_v4  ;;  %v6990_v4 = vld [vmem:[%s7258_s3] sm:$0xff]  }
 0x269   : > { %5598 = vmatprep.subr.bf16.mxu1 %v6113_v52  ;;  %5778 = vmatprep.subr.bf16.mxu0 %v6990_v4 }
 0x26a   : > { %5779 = vmatpush3.bf16.msra.mxu0 %v6990_v4 }
 0x26b   : > { %5780 = vmatprep.subr.bf16.mxu0 %v6996_v15 }
 0x26c   : > { %5599 = vmatpush3.bf16.msra.mxu1 %v6113_v52  ;;  %v6140_v52 = vld [vmem:[#allocation3 + $0x110] sm:$0xff]  }
 0x26d   : > { %5600 = vmatprep.subr.bf16.mxu1 %v6114_v37 }
 0x26e   : > { %5781 = vmatpush3.bf16.msra.mxu0 %v6996_v15 }
 0x26f   : > { %5782 = vmatprep.subr.bf16.mxu0 %v7008_v26 }
 0x270   : > { %5601 = vmatpush3.bf16.msra.mxu1 %v6114_v37 }
 0x271   : > { %5610 = vmatprep.subr.bf16.mxu1 %v6116_v13 }
 0x272   : > { %5783 = vmatpush3.bf16.msra.mxu0 %v7008_v26 }
 0x273   : > { %5603 = vmatmul.mubr.bf16.vlgmr.msra.gmra.mrb[0].mxu1 %v4939_v17 }
 0x274   : > { %5606 = vmatprep.mubr.bf16.mxu1 %v4940_v22  ;;  %5611 = vmatpush3.bf16.msra.mxu1 %v6116_v13  ;;  %v3169_v13 = vrot.slane %v3167_v8, 5  ;;  %v3181_v8 = vshll.u32 %v7035_v55, 16 }
 0x275   : > { %5612 = vmatprep.subr.bf16.mxu1 %v6118_v18 }
 0x278   : > { %5613 = vmatpush3.bf16.msra.mxu1 %v6118_v18  ;;  %v6139_v18 = vld [vmem:[#allocation2 + $0x38] ss:$8 sps:$4 sm:$0xff]  }
 0x279   : > { %5614 = vmatprep.subr.bf16.mxu1 %v6120_v28 }
 0x27b   : > { %5607 = vmatmul.mubr.bf16.gmra.mrb[4].mxu1 %v4941_v62  ;;  %v7014_v62 = vld [vmem:[%s7258_s3 + $0x18] sm:$0xff]  }
 0x27c   : > { %5615 = vmatpush3.bf16.msra.mxu1 %v6120_v28  ;;  %5626 = vmatprep.mubr.bf16.mxu1 %v4958_v32  ;;  %v3137_v28 = vld [vmem:[#allocation2 + $0x30] sm:$0xf]  ;;  %v3189_v32 = vshll.u32 %v3133_v25, 16 }
 0x27d   : > { %5616 = vmatprep.subr.bf16.mxu1 %v6121_v27  ;;  %5784 = vmatprep.subr.bf16.mxu0 %v7014_v62 }
 0x27e   : > { %v3191_v5 = vrot.slane %v3189_v32, 5  ;;  %5785 = vmatpush3.bf16.msra.mxu0 %v7014_v62 }
 0x280   : > { %5617 = vmatpush3.bf16.msra.mxu1 %v6121_v27  ;;  %v3186_v27 = vshrl.u32 %v3133_v25, 16  ;;  %v7051_v25 = vld [vmem:[#allocation2 + $0x44] sm:$0x1] }
 0x281   : > { %5618 = vmatprep.subr.bf16.mxu1 %v6122_v29 }
 0x282   : > { %v3188_v39 = vrot.slane %v3186_v27, 4 }
 0x284   : > { %5619 = vmatpush3.bf16.msra.mxu1 %v6122_v29  ;;  %v3135_v29 = vld [vmem:[#allocation2 + $0x28] sm:$0xf]  ;;  %v3192_v46 = vor.u32 %v3191_v5, %v3188_v39  ;;  %v6147_v5 = vld [vmem:[#allocation3 + $0x148] sm:$0xff]  }
 0x285   : > { %5620 = vmatprep.subr.bf16.mxu1 %v6123_v49  ;;  %v3200_v31 = vshrl.u32 %v3135_v29, 16  ;;  %v3203_v14 = vshll.u32 %v3135_v29, 16 }
 0x288   : > { %5621 = vmatpush3.bf16.msra.mxu1 %v6123_v49  ;;  %v3214_v49 = vshrl.u32 %v3137_v28, 16 }
 0x289   : > { %5622 = vmatprep.subr.bf16.mxu1 %v6124_v33 }
 0x28a   : > { %v3216_v40 = vrot.slane %v3214_v49, 4  ;;  %v7063_v49 = vld [vmem:[#allocation2 + $0x3c] sm:$0x1] }
 0x28c   : > { %5623 = vmatpush3.bf16.msra.mxu1 %v6124_v33  ;;  %v3217_v33 = vshll.u32 %v3137_v28, 16  ;;  %v7056_v28 = vld [vmem:[%s7258_s3 + $0x38] sm:$0xff]  }
 0x28d   : > { %5624 = vmatprep.subr.bf16.mxu1 %v6125_v35 }
 0x28e   : > { %v3219_v41 = vrot.slane %v3217_v33, 5 }
 0x290   : > { %5625 = vmatpush3.bf16.msra.mxu1 %v6125_v35  ;;  %v3175_v35 = vshll.u32 %v3131_v19, 16 }
 0x291   : > { %5634 = vmatprep.subr.bf16.mxu1 %v6126_v11 }
 0x293   : > { %5627 = vmatmul.mubr.bf16.vlgmr.msra.gmra.mrb[0].mxu1 %v4959_v63  ;;  %v3149_v63 = vrot.slane %v3147_v56, 5  ;;  %v3220_v56 = vor.u32 %v3219_v41, %v3216_v40  ;;  %v3237_v41 = vshll.u32 %v7063_v49, 16 }
 0x294   : > { %5630 = vmatprep.mubr.bf16.mxu1 %v4960_v43  ;;  %5635 = vmatpush3.bf16.msra.mxu1 %v6126_v11  ;;  %v7021_v11 = vld [vmem:[%s7258_s3 + $0x20] sm:$0xff]  }
 0x295   : > { %5636 = vmatprep.subr.bf16.mxu1 %v6127_v42  ;;  %v3150_v7 = vor.u32 %v3149_v63, %v3146_v61  ;;  %5786 = vmatprep.subr.bf16.mxu0 %v7021_v11  ;;  %v7025_v43 = vld [vmem:[#allocation2 + $0x24] sm:$0x1]  ;;  %v3228_v61 = vshrl.u32 %v3139_v48, 16  ;;  %v3231_v63 = vshll.u32 %v3139_v48, 16 }
 0x296   : > { %5787 = vmatpush3.bf16.msra.mxu0 %v7021_v11  ;;  %v3195_v58 = vshll.u32 %v7025_v43, 16 }
 0x297   : > { %v3151_v37 = vrot.slane %v3150_v7, 4  ;;  %v7045_v7 = vld [vmem:[%s7258_s3 + $0x30] sm:$0xff]  }
 0x298   : > { %5637 = vmatpush3.bf16.msra.mxu1 %v6127_v42  ;;  %v3141_v42 = vld [vmem:[#allocation2 + $0x40] sm:$0xf] }
 0x299   : > { %5638 = vmatprep.subr.bf16.mxu1 %v6128_v60  ;;  %v3156_v22 = vsel %vm6485_vm2, %v3151_v37, %v3155_v16  ;;  %v3242_v50 = vshrl.u32 %v3141_v42, 16  ;;  %v3221_v37 = vrot.slane %v3220_v56, 4  ;;  %v3197_v16 = vrot.slane %v3195_v58, 5 }
 0x29a   : > { %v3239_v56 = vrot.slane %v3237_v41, 5 }
 0x29b   : > { %5631 = vmatmul.mubr.bf16.gmra.mrb[4].mxu1 %v4961_v12  ;;  %v3165_v12 = vrot.slane %v3164_v1, 4  ;;  %v6145_v1 = vld [vmem:[#allocation3 + $0x138] sm:$0xff]   ;;  %v3244_v10 = vrot.slane %v3242_v50, 4 }
 0x29c   : > { %5639 = vmatpush3.bf16.msra.mxu1 %v6128_v60  ;;  %5650 = vmatprep.mubr.bf16.mxu1 %v6129_v44  ;;  %v3174_v60 = vrot.slane %v3172_v34, 4  ;;  %v6144_v44 = vld [vmem:[#allocation3 + $0x130] sm:$0xff]  }
 0x29d   : > { %5640 = vmatprep.subr.bf16.mxu1 %v6130_v51  ;;  %v3170_v17 = vsel %vm6485_vm2, %v3165_v12, %v3169_v13 }
 0x29e   : > { %v4982_v24 = vcombine.low %v3156_v22, %v3170_v17  ;;  %v3230_v17 = vrot.slane %v3228_v61, 4  ;;  %v6146_v22 = vld [vmem:[#allocation3 + $0x140] sm:$0xff]  }
 0x2a0   : > { %5641 = vmatpush3.bf16.msra.mxu1 %v6130_v51  ;;  %v3177_v51 = vrot.slane %v3175_v35, 5  ;;  %v3251_v35 = vshll.u32 %v7051_v25, 16 }
 0x2a1   : > { %5642 = vmatprep.subr.bf16.mxu1 %v6131_v45 }
 0x2a2   : > { %v3178_v57 = vor.u32 %v3177_v51, %v3174_v60  ;;  %v3409_v60 = vld [vmem:[#allocation2 + $0x8] sm:$0xe]  ;;  %v3253_v48 = vrot.slane %v3251_v35, 5 }
 0x2a3   : > { %v4994_v50 = vrot.slane %v3409_v60, 9  ;;  %v6157_v60 = vld [vmem:[#allocation2 + $0x10] ss:$8 sps:$4 sm:$0xff]  }
 0x2a4   : > { %5643 = vmatpush3.bf16.msra.mxu1 %v6131_v45  ;;  %v3202_v45 = vrot.slane %v3200_v31, 4  ;;  %v3179_v13 = vrot.slane %v3178_v57, 4  ;;  %v6190_v31 = vld [vmem:[%s6423_s15 + $0xd8] ss:$8 sps:$4 sm:$0xff]  }
 0x2a5   : > { %5644 = vmatprep.subr.bf16.mxu1 %v6132_v21  ;;  %5794 = vmatprep.mubr.bf16.mxu0 %v6190_v31 }
 0x2a8   : > { %5645 = vmatpush3.bf16.msra.mxu1 %v6132_v21  ;;  %v3205_v21 = vrot.slane %v3203_v14, 5 }
 0x2a9   : > { %5646 = vmatprep.subr.bf16.mxu1 %v6133_v6 }
 0x2ac   : > { %5647 = vmatpush3.bf16.msra.mxu1 %v6133_v6  ;;  %v7030_v6 = vld [vmem:[%s7258_s3 + $0x28] sm:$0xff]  }
 0x2ad   : > { %5648 = vmatprep.subr.bf16.mxu1 %v6134_v20  ;;  %5788 = vmatprep.subr.bf16.mxu0 %v7030_v6 }
 0x2ae   : > { %5789 = vmatpush3.bf16.msra.mxu0 %v7030_v6 }
 0x2af   : > { %5790 = vmatprep.subr.bf16.mxu0 %v7045_v7 }
 0x2b0   : > { %5649 = vmatpush3.bf16.msra.mxu1 %v6134_v20  ;;  %v3245_v20 = vshll.u32 %v3141_v42, 16 }
 0x2b1   : > { %5658 = vmatprep.subr.bf16.mxu1 %v6136_v59 }
 0x2b2   : > { %v3247_v12 = vrot.slane %v3245_v20, 5  ;;  %5791 = vmatpush3.bf16.msra.mxu0 %v7045_v7  ;;  %v3435_v20 = vrot.slane %v6983_v2, 5  ;;  %v6150_v2 = vld [vmem:[#allocation3 + $0x160] sm:$0xff]  }
 0x2b3   : > { %5651 = vmatmul.mubr.bf16.vlgmr.msra.gmra.mrb[0].mxu1 %v6135_v38  ;;  %v3206_v38 = vor.u32 %v3205_v21, %v3202_v45  ;;  %5792 = vmatprep.subr.bf16.mxu0 %v7056_v28  ;;  %v6191_v45 = vld [vmem:[%s6423_s15 + $0xe8] ss:$8 sps:$4 sm:$0xff]  }
 0x2b4   : > { %5654 = vmatprep.mubr.bf16.mxu1 %v6137_v9  ;;  %5659 = vmatpush3.bf16.msra.mxu1 %v6136_v59  ;;  %v7039_v59 = vld [vmem:[#allocation2 + $0x2c] sm:$0x1]  ;;  %v3193_v9 = vrot.slane %v3192_v46, 4  ;;  %v3248_v27 = vor.u32 %v3247_v12, %v3244_v10  ;;  %v6148_v46 = vld [vmem:[#allocation3 + $0x150] sm:$0xff]   ;;  %v3414_v10 = vld [vmem:[#allocation2 + $0x30] sm:$0xe] }
 0x2b5   : > { %5660 = vmatprep.subr.bf16.mxu1 %v6138_v54  ;;  %v6153_v12 = vld [vmem:[#allocation3 + $0x178] sm:$0xff]  }
 0x2b6   : > { %v3198_v19 = vsel %vm6485_vm2, %v3193_v9, %v3197_v16  ;;  %v3249_v42 = vrot.slane %v3248_v27, 4  ;;  %5793 = vmatpush3.bf16.msra.mxu0 %v7056_v28  ;;  %v3412_v9 = vld [vmem:[#allocation2 + $0x20] sm:$0xe]  ;;  %v3413_v16 = vld [vmem:[#allocation2 + $0x28] sm:$0xe] }
 0x2b8   : > { %5661 = vmatpush3.bf16.msra.mxu1 %v6138_v54  ;;  %v3223_v54 = vshll.u32 %v7032_v53, 16  ;;  %v3254_v57 = vsel %vm6485_vm2, %v3249_v42, %v3253_v48  ;;  %v6158_v42 = vld [vmem:[#allocation3 + $0x198] sm:$0xff]  }
 0x2b9   : > { %5662 = vmatprep.subr.bf16.mxu1 %v6140_v52  ;;  %5795 = vmatmul.mubr.bf16.vlgmr.msra.gmra.mrb[8].mxu0 %v6191_v45  ;;  %v3792_v45 = vld [vmem:[#allocation2 + $0x18] sm:$0xf] }
 0x2bb   : > { %5655 = vmatmul.mubr.bf16.gmra.mrb[4].mxu1 %v6139_v18  ;;  %v3233_v18 = vrot.slane %v3231_v63, 5  ;;  %v3436_v63 = vsel %vm6924_vm11, %v4994_v50, %v3435_v20  ;;  %v3821_v50 = vshrl.u32 %v3792_v45, 16  ;;  %v3824_v20 = vshll.u32 %v3792_v45, 16  ;;  %v7113_v45 = vld [vmem:[#allocation2 + $0x2c] sm:$0x1] }
 0x2bc   : > { %5663 = vmatpush3.bf16.msra.mxu1 %v6140_v52  ;;  %5674 = vmatprep.mubr.bf16.mxu1 %v4982_v24  ;;  %v3209_v52 = vshll.u32 %v7039_v59, 16  ;;  %v3225_v24 = vrot.slane %v3223_v54, 5  ;;  %v6151_v54 = vld [vmem:[#allocation3 + $0x168] sm:$0xff]  }
 0x2bd   : > { %5664 = vmatprep.subr.bf16.mxu1 %v6141_v23  ;;  %v3234_v34 = vor.u32 %v3233_v18, %v3230_v17  ;;  %v4999_v17 = vrot.slane %v3414_v10, 9  ;;  %v3455_v18 = vrot.slane %v7032_v53, 5  ;;  %v6165_v10 = vld [vmem:[#allocation2 + $0x30] ss:$8 sps:$4 sm:$0xff]  }
 0x2be   : > { %v3211_v32 = vrot.slane %v3209_v52, 5  ;;  %v3226_v29 = vsel %vm6485_vm2, %v3221_v37, %v3225_v24  ;;  %v3411_v52 = vld [vmem:[#allocation2 + $0x18] sm:$0xe]  ;;  %v4997_v37 = vrot.slane %v3412_v9, 9  ;;  %v6154_v24 = vld [vmem:[#allocation3 + $0x180] sm:$0xff]  }
 0x2bf   : > { %v3235_v21 = vrot.slane %v3234_v34, 4  ;;  %v3415_v34 = vld [vmem:[#allocation2 + $0x38] sm:$0xe] }
 0x2c0   : > { %5665 = vmatpush3.bf16.msra.mxu1 %v6141_v23  ;;  %v3207_v23 = vrot.slane %v3206_v38, 4  ;;  %v5000_v31 = vrot.slane %v3415_v34, 9 }
 0x2c1   : > { %5666 = vmatprep.subr.bf16.mxu1 %v6142_v30 }
 0x2c2   : > { %v3212_v39 = vsel %vm6485_vm2, %v3207_v23, %v3211_v32  ;;  %v3443_v23 = vrot.slane %v7035_v55, 5  ;;  %v3456_v32 = vsel %vm6924_vm11, %v4999_v17, %v3455_v18 }
 0x2c3   : > { %v4984_v40 = vcombine.low %v3212_v39, %v3226_v29  ;;  %v6156_v39 = vld [vmem:[#allocation3 + $0x190] sm:$0xff]  }
 0x2c4   : > { %5667 = vmatpush3.bf16.msra.mxu1 %v6142_v30  ;;  %v3183_v30 = vrot.slane %v3181_v8, 5  ;;  %v6152_v8 = vld [vmem:[#allocation3 + $0x170] sm:$0xff]  }
 0x2c5   : > { %5668 = vmatprep.subr.bf16.mxu1 %v6143_v36 }
 0x2c6   : > { %v3184_v33 = vsel %vm6485_vm2, %v3179_v13, %v3183_v30  ;;  %v3447_v13 = vrot.slane %v7025_v43, 5  ;;  %v4998_v30 = vrot.slane %v3413_v16, 9  ;;  %v3416_v43 = vld [vmem:[#allocation2 + $0x40] sm:$0xe] }
 0x2c7   : > { %v4983_v14 = vcombine.low %v3184_v33, %v3198_v19  ;;  %v3451_v19 = vrot.slane %v7039_v59, 5  ;;  %v6155_v33 = vld [vmem:[#allocation3 + $0x188] sm:$0xff]   ;;  %v5001_v59 = vrot.slane %v3416_v43, 9  ;;  %v3794_v43 = vld [vmem:[#allocation2 + $0x20] sm:$0xf] }
 0x2c8   : > { %5669 = vmatpush3.bf16.msra.mxu1 %v6143_v36  ;;  %v3410_v36 = vld [vmem:[#allocation2 + $0x10] sm:$0xe]  ;;  %v3448_v27 = vsel %vm6924_vm11, %v4997_v37, %v3447_v13  ;;  %v6168_v37 = vld [vmem:[#allocation3 + $0x1d0] sm:$0xff]  }
 0x2c9   : > { %5670 = vmatprep.subr.bf16.mxu1 %v6144_v44  ;;  %v4995_v51 = vrot.slane %v3410_v36, 9  ;;  %v3452_v55 = vsel %vm6924_vm11, %v4998_v30, %v3451_v19  ;;  %v3463_v36 = vrot.slane %v7051_v25, 5  ;;  %v6159_v25 = vld [vmem:[#allocation3 + $0x1a0] sm:$0xff]   ;;  %v3796_v19 = vld [vmem:[#allocation2 + $0x28] sm:$0xf] }
 0x2ca   : > { %v5004_v35 = vcombine.low %v3452_v55, %v3456_v32  ;;  %v6170_v32 = vld [vmem:[#allocation3 + $0x1e0] sm:$0xff]   ;;  %v3800_v55 = vld [vmem:[#allocation2 + $0x38] sm:$0xf] }
 0x2cc   : > { %5671 = vmatpush3.bf16.msra.mxu1 %v6144_v44  ;;  %v3439_v44 = vrot.slane %v6981_v0, 5  ;;  %v3240_v0 = vsel %vm6485_vm2, %v3235_v21, %v3239_v56 }
 0x2cd   : > { %5672 = vmatprep.subr.bf16.mxu1 %v6145_v1  ;;  %v4985_v61 = vcombine.low %v3240_v0, %v3254_v57  ;;  %v3823_v0 = vrot.slane %v3821_v50, 4 }
 0x2ce   : > { %v3440_v58 = vsel %vm6924_vm11, %v4995_v51, %v3439_v44  ;;  %v3790_v51 = vld [vmem:[#allocation2 + $0x10] sm:$0xf]  ;;  %v6161_v44 = vld [vmem:[#allocation3 + $0x1b0] sm:$0xff]  }
 0x2cf   : > { %v5002_v38 = vcombine.low %v3436_v63, %v3440_v58  ;;  %v3807_v21 = vshrl.u32 %v3790_v51, 16  ;;  %v3810_v48 = vshll.u32 %v3790_v51, 16  ;;  %v6164_v58 = vld [vmem:[#allocation3 + $0x1c0] sm:$0xff]  }
 0x2d0   : > { %5673 = vmatpush3.bf16.msra.mxu1 %v6145_v1  ;;  %v6149_v1 = vld [vmem:[#allocation3 + $0x158] sm:$0xff]   ;;  %v7103_v63 = vld [vmem:[#allocation2 + $0x14] sm:$0x1] }
 0x2d1   : > { %5682 = vmatprep.subr.bf16.mxu1 %v6146_v22  ;;  %v3809_v56 = vrot.slane %v3807_v21, 4  ;;  %v3812_v57 = vrot.slane %v3810_v48, 5 }
 0x2d3   : > { %5675 = vmatmul.mubr.bf16.vlgmr.msra.gmra.mrb[0].mxu1 %v4983_v14  ;;  %v3459_v14 = vrot.slane %v7063_v49, 5  ;;  %v6160_v49 = vld [vmem:[#allocation3 + $0x1a8] sm:$0xff]  }
 0x2d4   : > { %5678 = vmatprep.mubr.bf16.mxu1 %v4984_v40  ;;  %5683 = vmatpush3.bf16.msra.mxu1 %v6146_v22  ;;  %v4996_v22 = vrot.slane %v3411_v52, 9 }
 0x2d5   : > { %5684 = vmatprep.subr.bf16.mxu1 %v6147_v5  ;;  %v3460_v40 = vsel %vm6924_vm11, %v5000_v31, %v3459_v14  ;;  %v3877_v31 = vshrl.u32 %v3800_v55, 16  ;;  %v3880_v14 = vshll.u32 %v3800_v55, 16 }
 0x2d6   : > { %v3444_v53 = vsel %vm6924_vm11, %v4996_v22, %v3443_v23  ;;  %v6167_v22 = vld [vmem:[#allocation2 + $0x40] ss:$8 sps:$4 sm:$0xff]  }
 0x2d7   : > { %v5003_v29 = vcombine.low %v3444_v53, %v3448_v27  ;;  %v3798_v27 = vld [vmem:[#allocation2 + $0x30] sm:$0xf]  ;;  %v3849_v53 = vshrl.u32 %v3796_v19, 16  ;;  %v3879_v21 = vrot.slane %v3877_v31, 4  ;;  %v3882_v48 = vrot.slane %v3880_v14, 5 }
 0x2d8   : > { %5685 = vmatpush3.bf16.msra.mxu1 %v6147_v5  ;;  %v3464_v5 = vsel %vm6924_vm11, %v5001_v59, %v3463_v36  ;;  %v3866_v34 = vshll.u32 %v3798_v27, 16  ;;  %v3838_v59 = vshll.u32 %v3794_v43, 16  ;;  %v6171_v36 = vld [vmem:[#allocation3 + $0x1e8] sm:$0xff]   ;;  %v4072_v31 = vld [vmem:[#allocation2 + $0x10] sm:$0xe] }
 0x2d9   : > { %5686 = vmatprep.subr.bf16.mxu1 %v6148_v46  ;;  %v5005_v41 = vcombine.low %v3460_v40, %v3464_v5  ;;  %v3851_v5 = vrot.slane %v3849_v53, 4 }
 0x2db   : > { %5679 = vmatmul.mubr.bf16.gmra.mrb[4].mxu1 %v4985_v61  ;;  %v3826_v61 = vrot.slane %v3824_v20, 5  ;;  %v7115_v20 = vld [vmem:[#allocation2 + $0x34] sm:$0x1] }
 0x2dc   : > { %5687 = vmatpush3.bf16.msra.mxu1 %v6148_v46  ;;  %5698 = vmatprep.mubr.bf16.mxu1 %v5002_v38  ;;  %v6162_v46 = vld [vmem:[#allocation3 + $0x1b8] sm:$0xff]   ;;  %v7105_v38 = vld [vmem:[#allocation2 + $0x1c] sm:$0x1] }
 0x2dd   : > { %5688 = vmatprep.subr.bf16.mxu1 %v6149_v1  ;;  %v3827_v9 = vor.u32 %v3826_v61, %v3823_v0  ;;  %v3830_v52 = vshll.u32 %v7105_v38, 16 }
 0x2df   : > { %v3828_v16 = vrot.slane %v3827_v9, 4  ;;  %v3832_v18 = vrot.slane %v3830_v52, 5  ;;  %v3883_v9 = vor.u32 %v3882_v48, %v3879_v21  ;;  %v6178_v21 = vld [vmem:[#allocation3 + $0x210] sm:$0xff]  }
 0x2e0   : > { %5689 = vmatpush3.bf16.msra.mxu1 %v6149_v1  ;;  %v3813_v1 = vor.u32 %v3812_v57, %v3809_v56 }
 0x2e1   : > { %5690 = vmatprep.subr.bf16.mxu1 %v6150_v2  ;;  %v3833_v23 = vsel %vm6485_vm2, %v3828_v16, %v3832_v18 }
 0x2e4   : > { %5691 = vmatpush3.bf16.msra.mxu1 %v6150_v2  ;;  %v6163_v2 = vld [vmem:[#allocation2 + $0x20] ss:$8 sps:$4 sm:$0xff]  }
 0x2e5   : > { %5692 = vmatprep.subr.bf16.mxu1 %v6151_v54 }
 0x2e8   : > { %5693 = vmatpush3.bf16.msra.mxu1 %v6151_v54  ;;  %v6166_v54 = vld [vmem:[#allocation3 + $0x1c8] sm:$0xff]  }
 0x2e9   : > { %5694 = vmatprep.subr.bf16.mxu1 %v6152_v8 }
 0x2ec   : > { %5695 = vmatpush3.bf16.msra.mxu1 %v6152_v8  ;;  %v3816_v8 = vshll.u32 %v7103_v63, 16 }
 0x2ed   : > { %5696 = vmatprep.subr.bf16.mxu1 %v6153_v12 }
 0x2ee   : > { %v3818_v13 = vrot.slane %v3816_v8, 5  ;;  %v3872_v8 = vshll.u32 %v7115_v20, 16 }
 0x2f0   : > { %5697 = vmatpush3.bf16.msra.mxu1 %v6153_v12  ;;  %v3814_v12 = vrot.slane %v3813_v1, 4  ;;  %v3858_v1 = vshll.u32 %v7113_v45, 16 }
 0x2f1   : > { %5706 = vmatprep.subr.bf16.mxu1 %v6154_v24 }
 0x2f2   : > { %v3819_v17 = vsel %vm6485_vm2, %v3814_v12, %v3818_v13 }
 0x2f3   : > { %5699 = vmatmul.mubr.bf16.vlgmr.msra.gmra.mrb[0].mxu1 %v5003_v29  ;;  %v5026_v30 = vcombine.low %v3819_v17, %v3833_v23  ;;  %v3852_v29 = vshll.u32 %v3796_v19, 16  ;;  %v3860_v23 = vrot.slane %v3858_v1, 5  ;;  %v3874_v19 = vrot.slane %v3872_v8, 5  ;;  %v4075_v8 = vld [vmem:[#allocation2 + $0x28] sm:$0xe] }
 0x2f4   : > { %5702 = vmatprep.mubr.bf16.mxu1 %v5004_v35  ;;  %5707 = vmatpush3.bf16.msra.mxu1 %v6154_v24  ;;  %v6169_v24 = vld [vmem:[#allocation3 + $0x1d8] sm:$0xff]   ;;  %v3835_v35 = vshrl.u32 %v3794_v43, 16 }
 0x2f5   : > { %5708 = vmatprep.subr.bf16.mxu1 %v6155_v33  ;;  %v3854_v40 = vrot.slane %v3852_v29, 5 }
 0x2f7   : > { %v3855_v50 = vor.u32 %v3854_v40, %v3851_v5  ;;  %v6176_v5 = vld [vmem:[#allocation3 + $0x208] sm:$0xff]  }
 0x2f8   : > { %5709 = vmatpush3.bf16.msra.mxu1 %v6155_v33  ;;  %v3863_v33 = vshrl.u32 %v3798_v27, 16  ;;  %v3884_v27 = vrot.slane %v3883_v9, 4  ;;  %v4076_v9 = vld [vmem:[#allocation2 + $0x30] sm:$0xe] }
 0x2f9   : > { %5710 = vmatprep.subr.bf16.mxu1 %v6156_v39 }
 0x2fb   : > { %5703 = vmatmul.mubr.bf16.gmra.mrb[4].mxu1 %v5005_v41  ;;  %v3865_v41 = vrot.slane %v3863_v33, 4 }
 0x2fc   : > { %5711 = vmatpush3.bf16.msra.mxu1 %v6156_v39  ;;  %5722 = vmatprep.mubr.bf16.mxu1 %v6157_v60  ;;  %v3804_v39 = vld [vmem:[#allocation2 + $0x48] sm:$0xf]  ;;  %v3802_v60 = vld [vmem:[#allocation2 + $0x40] sm:$0xf] }
 0x2fd   : > { %5712 = vmatprep.subr.bf16.mxu1 %v6158_v42  ;;  %v3905_v51 = vshrl.u32 %v3804_v39, 16  ;;  %v3891_v56 = vshrl.u32 %v3802_v60, 16  ;;  %v3894_v57 = vshll.u32 %v3802_v60, 16 }
 0x2ff   : > { %v3893_v13 = vrot.slane %v3891_v56, 4  ;;  %v3896_v16 = vrot.slane %v3894_v57, 5 }
 0x300   : > { %5713 = vmatpush3.bf16.msra.mxu1 %v6158_v42  ;;  %v3868_v42 = vrot.slane %v3866_v34, 5 }
 0x301   : > { %5714 = vmatprep.subr.bf16.mxu1 %v6159_v25  ;;  %v3897_v55 = vor.u32 %v3896_v16, %v3893_v13  ;;  %v4077_v13 = vld [vmem:[#allocation2 + $0x38] sm:$0xe]  ;;  %v5042_v16 = vrot.slane %v4076_v9, 9 }
 0x302   : > { %v3869_v0 = vor.u32 %v3868_v42, %v3865_v41 }
 0x303   : > { %v3898_v41 = vrot.slane %v3897_v55, 4 }
 0x304   : > { %5715 = vmatpush3.bf16.msra.mxu1 %v6159_v25  ;;  %v3837_v25 = vrot.slane %v3835_v35, 4  ;;  %v3870_v17 = vrot.slane %v3869_v0, 4 }
 0x305   : > { %5716 = vmatprep.subr.bf16.mxu1 %v6160_v49 }
 0x306   : > { %v3875_v34 = vsel %vm6485_vm2, %v3870_v17, %v3874_v19  ;;  %v4114_v17 = vrot.slane %v7115_v20, 5 }
 0x308   : > { %5717 = vmatpush3.bf16.msra.mxu1 %v6160_v49  ;;  %v3840_v49 = vrot.slane %v3838_v59, 5 }
 0x309   : > { %5718 = vmatprep.subr.bf16.mxu1 %v6161_v44 }
 0x30a   : > { %v3841_v61 = vor.u32 %v3840_v49, %v3837_v25  ;;  %v4073_v25 = vld [vmem:[#allocation2 + $0x18] sm:$0xe]  ;;  %v5038_v49 = vrot.slane %v4072_v31, 9 }
 0x30b   : > { %v5039_v48 = vrot.slane %v4073_v25, 9 }
 0x30c   : > { %5719 = vmatpush3.bf16.msra.mxu1 %v6161_v44  ;;  %v6172_v44 = vld [vmem:[#allocation3 + $0x1f0] sm:$0xff]  }
 0x30d   : > { %5720 = vmatprep.subr.bf16.mxu1 %v6162_v46 }
 0x310   : > { %5721 = vmatpush3.bf16.msra.mxu1 %v6162_v46  ;;  %v3908_v46 = vshll.u32 %v3804_v39, 16 }
 0x311   : > { %5730 = vmatprep.subr.bf16.mxu1 %v6164_v58 }
 0x312   : > { %v3910_v12 = vrot.slane %v3908_v46, 5  ;;  %v4102_v46 = vrot.slane %v7105_v38, 5  ;;  %v6182_v38 = vld [vmem:[#allocation3 + $0x220] sm:$0xff]  }
 0x313   : > { %5723 = vmatmul.mubr.bf16.vlgmr.msra.gmra.mrb[0].mxu1 %v6163_v2  ;;  %v7120_v2 = vld [vmem:[#allocation2 + $0x3c] sm:$0x1] }
 0x314   : > { %5726 = vmatprep.mubr.bf16.mxu1 %v6165_v10  ;;  %5731 = vmatpush3.bf16.msra.mxu1 %v6164_v58  ;;  %v7117_v58 = vld [vmem:[#allocation2 + $0x24] sm:$0x1]  ;;  %v3907_v10 = vrot.slane %v3905_v51, 4  ;;  %v3886_v18 = vshll.u32 %v7120_v2, 16  ;;  %v4098_v51 = vrot.slane %v7103_v63, 5  ;;  %v4103_v63 = vsel %vm6924_vm11, %v5039_v48, %v4102_v46 }
 0x315   : > { %5732 = vmatprep.subr.bf16.mxu1 %v6166_v54  ;;  %v3844_v52 = vshll.u32 %v7117_v58, 16 }
 0x316   : > { %v3911_v43 = vor.u32 %v3910_v12, %v3907_v10  ;;  %v3888_v35 = vrot.slane %v3886_v18, 5  ;;  %v4099_v57 = vsel %vm6924_vm11, %v5038_v49, %v4098_v51  ;;  %v6188_v10 = vld [vmem:[#allocation3 + $0x238] sm:$0xff]   ;;  %v4074_v12 = vld [vmem:[#allocation2 + $0x20] sm:$0xe] }
 0x317   : > { %v3846_v53 = vrot.slane %v3844_v52, 5  ;;  %v5046_v1 = vcombine.low %v4099_v57, %v4103_v63  ;;  %v5041_v52 = vrot.slane %v4075_v8, 9  ;;  %v5040_v18 = vrot.slane %v4074_v12, 9 }
 0x318   : > { %5733 = vmatpush3.bf16.msra.mxu1 %v6166_v54  ;;  %v6173_v54 = vld [vmem:[#allocation3 + $0x1f8] sm:$0xff]   ;;  %v3889_v39 = vsel %vm6485_vm2, %v3884_v27, %v3888_v35  ;;  %v3912_v42 = vrot.slane %v3911_v43, 4  ;;  %v4115_v43 = vsel %vm6924_vm11, %v5042_v16, %v4114_v17 }
 0x319   : > { %5734 = vmatprep.subr.bf16.mxu1 %v6168_v37  ;;  %v5028_v40 = vcombine.low %v3875_v34, %v3889_v39  ;;  %v4079_v27 = vld [vmem:[#allocation2 + $0x48] sm:$0xe] }
 0x31b   : > { %5727 = vmatmul.mubr.bf16.gmra.mrb[4].mxu1 %v6167_v22  ;;  %v3842_v22 = vrot.slane %v3841_v61, 4  ;;  %v6180_v61 = vld [vmem:[#allocation3 + $0x218] sm:$0xff]  }
 0x31c   : > { %5735 = vmatpush3.bf16.msra.mxu1 %v6168_v37  ;;  %5746 = vmatprep.mubr.bf16.mxu1 %v5026_v30  ;;  %v3856_v37 = vrot.slane %v3855_v50, 4  ;;  %v6174_v30 = vld [vmem:[#allocation3 + $0x200] sm:$0xff]  }
 0x31d   : > { %5736 = vmatprep.subr.bf16.mxu1 %v6169_v24  ;;  %v3847_v59 = vsel %vm6485_vm2, %v3842_v22, %v3846_v53  ;;  %v4106_v22 = vrot.slane %v7117_v58, 5 }
 0x31e   : > { %v3861_v29 = vsel %vm6485_vm2, %v3856_v37, %v3860_v23  ;;  %v4110_v37 = vrot.slane %v7113_v45, 5  ;;  %v5043_v23 = vrot.slane %v4077_v13, 9  ;;  %v4078_v45 = vld [vmem:[#allocation2 + $0x40] sm:$0xe] }
 0x31f   : > { %v5027_v14 = vcombine.low %v3847_v59, %v3861_v29  ;;  %v4107_v20 = vsel %vm6924_vm11, %v5040_v18, %v4106_v22  ;;  %v5044_v55 = vrot.slane %v4078_v45, 9 }
 0x320   : > { %5737 = vmatpush3.bf16.msra.mxu1 %v6169_v24  ;;  %v7125_v24 = vld [vmem:[#allocation2 + $0x4c] sm:$0x1]  ;;  %v4111_v19 = vsel %vm6924_vm11, %v5041_v52, %v4110_v37 }
 0x321   : > { %5738 = vmatprep.subr.bf16.mxu1 %v6170_v32  ;;  %v3914_v33 = vshll.u32 %v7125_v24, 16  ;;  %v5047_v53 = vcombine.low %v4107_v20, %v4111_v19  ;;  %v4126_v34 = vrot.slane %v7125_v24, 5 }
 0x323   : > { %v3916_v60 = vrot.slane %v3914_v33, 5 }
 0x324   : > { %5739 = vmatpush3.bf16.msra.mxu1 %v6170_v32  ;;  %v7127_v32 = vld [vmem:[#allocation2 + $0x44] sm:$0x1] }
 0x325   : > { %5740 = vmatprep.subr.bf16.mxu1 %v6171_v36  ;;  %v3917_v56 = vsel %vm6485_vm2, %v3912_v42, %v3916_v60  ;;  %v4122_v33 = vrot.slane %v7127_v32, 5 }
 0x327   : > { %v4123_v35 = vsel %vm6924_vm11, %v5044_v55, %v4122_v33 }
 0x328   : > { %5741 = vmatpush3.bf16.msra.mxu1 %v6171_v36  ;;  %v3900_v36 = vshll.u32 %v7127_v32, 16 }
 0x329   : > { %5742 = vmatprep.subr.bf16.mxu1 %v6172_v44 }
 0x32c   : > { %5743 = vmatpush3.bf16.msra.mxu1 %v6172_v44  ;;  %v3902_v44 = vrot.slane %v3900_v36, 5  ;;  %v6192_v36 = vld [vmem:[%s6423_s15 + $0xf8] ss:$8 sps:$4 sm:$0xff]  }
 0x32d   : > { %5744 = vmatprep.subr.bf16.mxu1 %v6173_v54 }
 0x32e   : > { %v3903_v50 = vsel %vm6485_vm2, %v3898_v41, %v3902_v44 }
 0x32f   : > { %v5029_v0 = vcombine.low %v3903_v50, %v3917_v56 }
 0x330   : > { %5745 = vmatpush3.bf16.msra.mxu1 %v6173_v54  ;;  %v6186_v54 = vld [vmem:[#allocation3 + $0x230] sm:$0xff]  }
 0x331   : > { %5754 = vmatprep.subr.bf16.mxu1 %v6174_v30 }
 0x333   : > { %5747 = vmatmul.mubr.bf16.vlgmr.msra.gmra.mrb[0].mxu1 %v5027_v14 }
 0x334   : > { %5750 = vmatprep.mubr.bf16.mxu1 %v5028_v40  ;;  %5755 = vmatpush3.bf16.msra.mxu1 %v6174_v30  ;;  %v4118_v30 = vrot.slane %v7120_v2, 5  ;;  %v5045_v2 = vrot.slane %v4079_v27, 9 }
 0x335   : > { %5756 = vmatprep.subr.bf16.mxu1 %v6176_v5 }
 0x336   : > { %v4119_v58 = vsel %vm6924_vm11, %v5043_v23, %v4118_v30  ;;  %v4127_v59 = vsel %vm6924_vm11, %v5045_v2, %v4126_v34 }
 0x337   : > { %v5048_v29 = vcombine.low %v4115_v43, %v4119_v58  ;;  %v5049_v31 = vcombine.low %v4123_v35, %v4127_v59 }
 0x338   : > { %5757 = vmatpush3.bf16.msra.mxu1 %v6176_v5  ;;  %v5080_v5 = vld [vmem:[%s7259_s4 + $0x4] ss:$0 sm:$0xff] }
 0x339   : > { %5758 = vmatprep.subr.bf16.mxu1 %v6178_v21 }
 0x33b   : > { %5751 = vmatmul.mubr.bf16.gmra.mrb[4].mxu1 %v5029_v0 }
 0x33c   : > { %5759 = vmatpush3.bf16.msra.mxu1 %v6178_v21  ;;  %5770 = vmatprep.mubr.bf16.mxu1 %v5046_v1 }
 0x33d   : > { %5760 = vmatprep.subr.bf16.mxu1 %v6180_v61 }
 0x340   : > { %5761 = vmatpush3.bf16.msra.mxu1 %v6180_v61 }
 0x341   : > { %5762 = vmatprep.subr.bf16.mxu1 %v6182_v38 }
 0x344   : > { %5763 = vmatpush3.bf16.msra.mxu1 %v6182_v38 }
 0x345   : > { %5764 = vmatprep.subr.bf16.mxu1 %v6184_v47 }
 0x348   : > { %5765 = vmatpush3.bf16.msra.mxu1 %v6184_v47 }
 0x349   : > { %5766 = vmatprep.subr.bf16.mxu1 %v6186_v54 }
 0x34c   : > { %5767 = vmatpush3.bf16.msra.mxu1 %v6186_v54 }
 0x34d   : > { %5768 = vmatprep.subr.bf16.mxu1 %v6188_v10 }
 0x350   : > { %5769 = vmatpush3.bf16.msra.mxu1 %v6188_v10 }
 0x351   : > { %5802 = vmatprep.subr.bf16.mxu1 %v6990_v4 }
 0x353   : > { %5771 = vmatmul.mubr.bf16.vlgmr.msra.gmra.mrb[0].mxu1 %v5047_v53 }
 0x354   : > { %5774 = vmatprep.mubr.bf16.mxu1 %v5048_v29  ;;  %5810 = vmatpush3.bf16.msra.mxu1 %v6990_v4 }
 0x355   : > { %5803 = vmatprep.subr.bf16.mxu1 %v6996_v15 }
 0x358   : > { %5811 = vmatpush3.bf16.msra.mxu1 %v6996_v15 }
 0x359   : > { %5804 = vmatprep.subr.bf16.mxu1 %v7008_v26 }
 0x35b   : > { %5775 = vmatmul.mubr.bf16.gmra.mrb[4].mxu1 %v5049_v31 }
 0x35c   : > { %5812 = vmatpush3.bf16.msra.mxu1 %v7008_v26  ;;  %5798 = vmatprep.mubr.bf16.mxu1 %v6192_v36 }
 0x35d   : > { %5805 = vmatprep.subr.bf16.mxu1 %v7014_v62 }
 0x360   : > { %5813 = vmatpush3.bf16.msra.mxu1 %v7014_v62 }
 0x361   : > { %5806 = vmatprep.subr.bf16.mxu1 %v7021_v11 }
 0x364   : > { %5814 = vmatpush3.bf16.msra.mxu1 %v7021_v11  ;;  %v5079_v11 = vld [vmem:[%s7259_s4 + $0x3] ss:$0 sm:$0xff] }
 0x365   : > { %5807 = vmatprep.subr.bf16.mxu1 %v7030_v6 }
 0x368   : > { %5815 = vmatpush3.bf16.msra.mxu1 %v7030_v6  ;;  %v5078_v6 = vld [vmem:[%s7259_s4 + $0x2] ss:$0 sm:$0xff] }
 0x369   : > { %5808 = vmatprep.subr.bf16.mxu1 %v7045_v7 }
 0x36c   : > { %5816 = vmatpush3.bf16.msra.mxu1 %v7045_v7 }
 0x36d   : > { %5809 = vmatprep.subr.bf16.mxu1 %v7056_v28 }
 0x370   : > { %5817 = vmatpush3.bf16.msra.mxu1 %v7056_v28 }
 0x373   : > { %5799 = vmatmul.mubr.bf16.vlgmr.msra.gmra.mrb[8].mxu1 %v6193_v3 }
 0x38c   : > { %v5796_v4 = vpop.f32.mrb[8].mxu0 }
 0x38d   : > { %v4412_v15 = vpop.f32.mrb[9].mxu0  ;;  %v4461_v7 = vmul.f32 %v5796_v4, %v5079_v11 }
 0x38e   : > { %v5797_v26 = vpop.f32.mrb[10].mxu0  ;;  %v4459_v32 = vmul.f32 %v5079_v11, %v4412_v15 }
 0x38f   : > { %v4415_v62 = vpop.f32.mrb[11].mxu0  ;;  %v4462_v28 = vmul.f32 %v5797_v26, %v5079_v11 }
 0x390   : > { %v4460_v42 = vmul.f32 %v5079_v11, %v4415_v62 }
 0x426   : > { %v5772_v24 = vpop.f32.mrb[0].mxu1 }
 0x427   : > { %v4449_v14 = vmul.f32 %v5772_v24, %v5078_v6  ;;  %v4243_v39 = vpop.f32.mrb[1].mxu1 }
 0x428   : > { %v4447_v40 = vmul.f32 %v5078_v6, %v4243_v39  ;;  %v5773_v41 = vpop.f32.mrb[2].mxu1 }
 0x429   : > { %v4469_v60 = vadd.f32 %v4461_v7, %v4449_v14  ;;  %v4450_v25 = vmul.f32 %v5773_v41, %v5078_v6  ;;  %v4246_v49 = vpop.f32.mrb[3].mxu1 }
 0x42a   : > { %v4467_v51 = vadd.f32 %v4459_v32, %v4447_v40  ;;  %v4448_v44 = vmul.f32 %v5078_v6, %v4246_v49 }
 0x42b   : > { %v4481_v21 = vadd.f32 %v5080_v5, %v4469_v60  ;;  %v4470_v48 = vadd.f32 %v4462_v28, %v4450_v25 }
 0x42c   : > { %v4479_v46 = vadd.f32 %v5080_v5, %v4467_v51  ;;  %v4468_v50 = vadd.f32 %v4460_v42, %v4448_v44 }
 0x42d   : > { %v4482_v56 = vadd.f32 %v5080_v5, %v4470_v48  ;;  %v4489_v63 = vmax.f32 %v4481_v21, 0.0 }
 0x42e   : > { %v4480_v57 = vadd.f32 %v5080_v5, %v4468_v50  ;;  %v5776_v0 = vpop.f32.mrb[4].mxu1  ;;  %v4487_v38 = vmax.f32 %v4479_v46, 0.0 }
 0x42f   : > { %v4490_v61 = vmax.f32 %v4482_v56, 0.0  ;;  %v4259_v1 = vpop.f32.mrb[5].mxu1  ;;  %v4453_v52 = vmul.f32 %v5776_v0, %v5078_v6 }
 0x430   : > { %v4488_v47 = vmax.f32 %v4480_v57, 0.0  ;;  %v5777_v54 = vpop.f32.mrb[6].mxu1  ;;  %v4451_v16 = vmul.f32 %v5078_v6, %v4259_v1 }
 0x431   : > { %v5103_v8 = vpack.c.bf16 %v4490_v61, %v4489_v63  ;;  %v4262_v9 = vpop.f32.mrb[7].mxu1  ;;  %v4454_v22 = vmul.f32 %v5777_v54, %v5078_v6 }
 0x432   : > { %v5098_v10 = vpack.c.bf16 %v4488_v47, %v4487_v38  ;;  %v4452_v27 = vmul.f32 %v5078_v6, %v4262_v9 }
 0x433   : > { %5115 = vst [vmem:[%s7197_s16 + $0x8] sm:$0xff] %v5103_v8  }
 0x434   : > { %5099 = vst [vmem:[%s7197_s16] sm:$0xff] %v5098_v10  }
 0x446   : > { %v5800_v12 = vpop.f32.mrb[8].mxu1 }
 0x447   : > { %v4465_v37 = vmul.f32 %v5800_v12, %v5079_v11  ;;  %v4428_v13 = vpop.f32.mrb[9].mxu1 }
 0x448   : > { %v4463_v17 = vmul.f32 %v5079_v11, %v4428_v13  ;;  %v5801_v18 = vpop.f32.mrb[10].mxu1 }
 0x449   : > { %v4473_v23 = vadd.f32 %v4465_v37, %v4453_v52  ;;  %v4466_v30 = vmul.f32 %v5801_v18, %v5079_v11  ;;  %v4431_v19 = vpop.f32.mrb[11].mxu1 }
 0x44a   : > { %v4471_v43 = vadd.f32 %v4463_v17, %v4451_v16  ;;  %v4464_v45 = vmul.f32 %v5079_v11, %v4431_v19 }
 0x44b   : > { %v4485_v20 = vadd.f32 %v5080_v5, %v4473_v23  ;;  %v4474_v53 = vadd.f32 %v4466_v30, %v4454_v22 }
 0x44c   : > { %v4483_v58 = vadd.f32 %v5080_v5, %v4471_v43  ;;  %v4472_v2 = vadd.f32 %v4464_v45, %v4452_v27 }
 0x44d   : > { %v4486_v29 = vadd.f32 %v5080_v5, %v4474_v53  ;;  %v4493_v33 = vmax.f32 %v4485_v20, 0.0 }
 0x44e   : > { %v4484_v55 = vadd.f32 %v5080_v5, %v4472_v2  ;;  %v4491_v35 = vmax.f32 %v4483_v58, 0.0 }
 0x44f   : > { %v4494_v34 = vmax.f32 %v4486_v29, 0.0 }
 0x450   : > { %v4492_v59 = vmax.f32 %v4484_v55, 0.0 }
 0x451   : > { %v5113_v36 = vpack.c.bf16 %v4494_v34, %v4493_v33 }
 0x452   : > { %v5108_v31 = vpack.c.bf16 %v4492_v59, %v4491_v35 }
 0x453   : > { %5117 = vst [vmem:[%s7197_s16 + $0x18] sm:$0xff] %v5113_v36  }
 0x454   : > { %5116 = vst [vmem:[%s7197_s16 + $0x10] sm:$0xff] %v5108_v31  }
 0x455   : > { %6235 = shalt.err (!%p6232_p7)
}
 0x456   : > { %s6236_s30 = scalar_lea.hbm %s7208_s6, 512  ;;  %s6240_s12 = scalar_lea.hbm %s7260_s5, 1024 }
 0x457   : > { %p6237_p8 = scmp.ne.s32.totalorder %s7208_s6, %s6236_s30  ;;  %p6241_p1 = scmp.lt.u32.totalorder %s7208_s6, %s7260_s5 }
 0x458   : > { %p6242_p0 = scmp.lt.u32.totalorder %s6240_s12, %s6236_s30  ;;  %p6244_p6 = scmp.lt.u32.totalorder %s6236_s30, %s7208_s6 }
 0x459   : > { %p6238_p11 = pnand %p6237_p8, %p7279_p9 }
 0x45a   : > { %p6243_p5 = por %p6242_p0, %p6241_p1 }
 0x45b   : > { %p6239_p13 = pneg %p6238_p11 }
 0x45c   : > { %p6245_p10 = por %p6244_p6, %p6243_p5 }
 0x45e   : > { %p6246_p12 = pnand %p6245_p10, %p6239_p13 }
 0x460   : > { %6249 = shalt.err (!%p6246_p12)
}
 0x461   : > { %s6295_s16 = smov 64   ;;  %s6296_s23 = smov 4  }
 0x462   : > { %5951 = dma.vmem_to_hbm [thread:$0]  (%p7279_p9), %s7203_s17, 512, %s7208_s6, %s7214_s9, %s6295_s16, %s6295_s16, %s6296_s23  }
 0x463 PF: > { %p5963_p2 = scmp.ge.s32.totalorder %s6288_s21, 2  ;;  %s4540_s25 = sand.u32 1, %s6276_s18  }
 0x464   : > { %p7280_p3 = scmp.ne.s32.totalorder %s7265_s29, 0  ;;  %s4541_s26 = scalar_lea.sflag [#allocation5], %s4540_s25 }
 0x466   : > { %p5958_p4 = pnand %p5963_p2, %p7280_p3 }
 0x468   : > { %6271 = dma.done.wait (!%p5958_p4), %s4541_s26, 512  }
 0x469   : > { %6273 = vsyncadd (!%p5958_p4), %s4541_s26, 4294966784  ;;  %p16_p7 = scmp.ge.s32.totalorder %s6352_s24, 4   ;;  %s7281_s18 = smov %s6280_s19 }
 0x46a   : > { %s7282_s19 = smov %s6284_s20  ;;  %s7283_s20 = smov %s6363_s27 }
 0x46b   : > { %s7284_s21 = smov %s6352_s24  ;;  %18 = sbr.rel (!%p16_p7) target bundleno = 4 (0x4), region = 103 }
 0x472   :  { %4546 = vsyncpa [#allocation4], 1 }
 0x473   :  { %4548 = vsyncpa [#allocation4 + $0x1], 1 }
 0x474   :  { %4549 = vsyncpa [#allocation5], 1 }
 0x475   :  { %4551 = vsyncpa [#allocation5 + $0x1], 1 }

</bundles_post_ra>
